<compile_context>
chip_gen: v7x
topology: tpu7x:2x2x1
jax: 0.10.0
libtpu: 0.0.40
codegen_flags: <defaults>
</compile_context>

<pallas_src>
import jax
import jax.numpy as jnp
from jax.experimental import pallas as pl
from jax.experimental.pallas import tpu as pltpu

# Synthetic stand-in for Config.N_FEATURES / Config.N_ACTIONS.
N_FEATURES = 16
N_ACTIONS = 4
H1 = N_FEATURES * 8          # 128  trunk width
H2 = N_FEATURES * 2          # 32   value-head hidden width
HEAD = N_ACTIONS + H2        # 36   fused head width ([advantage | value-hidden])

WEIGHT_DTYPE = jnp.bfloat16  # bf16 storage for the two large matmuls, f32 accumulate
BATCH = 384                  # example batch (splits 2x192 on v7x, 1x384 on v5e/v6e)


def _round_up(x, m):
    return ((x + m - 1) // m) * m


def _prelu(x, alpha):
    # nn.PReLU() with a single shared parameter.
    return jnp.where(x >= 0, x, alpha * x)


def dqn_kernel(scal_ref,           # SMEM (4,) f32: [alpha1, alpha2, alpha3, bv2]
               x_ref,              # (tile_b, F)        f32
               w1_ref,             # (F, H1)            f32   (K=16 matmul, latency-hidden)
               w2_ref,             # (H1, H1)           bf16
               wh_ref,             # (H1, HEAD)         bf16  [Wa | Wv1]
               wv2_ref,            # (1, HEAD)          f32   [0...0 | wv2]
               b12_ref,            # (2, H1)            f32   [b1 ; b2]
               bh_ref,             # (1, HEAD)          f32   [ba | bv1]
               out_ref):           # (tile_b, A)        f32
    a1 = scal_ref[0]
    a2 = scal_ref[1]
    a3 = scal_ref[2]
    bv2 = scal_ref[3]
    b12 = b12_ref[...]

    # Trunk layer 1: f32 x f32 (tiny K=16 matmul, fully hidden -> keep input precision).
    h = jnp.dot(x_ref[...], w1_ref[...], preferred_element_type=jnp.float32) + b12[0:1, :]
    h = _prelu(h, a1)

    # Trunk layer 2: bf16 weights, f32 accumulation on the MXU.
    h = jnp.dot(h.astype(WEIGHT_DTYPE), w2_ref[...],
                preferred_element_type=jnp.float32) + b12[1:2, :]
    h = _prelu(h, a2)

    # Fused heads: one MXU matmul; lanes [0:A] = advantage, lanes [A:] = value hidden.
    head = jnp.dot(h.astype(WEIGHT_DTYPE), wh_ref[...],
                   preferred_element_type=jnp.float32) + bh_ref[...]

    adv = head[:, :N_ACTIONS]        # lanes 0..A-1 -> aligned with out_ref, no lane shuffle
    # PReLU on the whole head tile (pure VPU); advantage lanes are only consumed
    # through the zero weights in wv2_ref, so this is harmless and avoids a slice.
    v_full = _prelu(head, a3)

    # Value layer 2 (H2 -> 1): VPU multiply + lane reduce instead of a K=32,N=1 matmul.
    value = jnp.sum(v_full * wv2_ref[...], axis=-1, keepdims=True) + bv2   # (tile_b, 1)

    # Exact dueling mean over the A=4 advantage lanes (cheap lane reduce).
    adv_mean = jnp.mean(adv, axis=-1, keepdims=True)
    out_ref[...] = (value + adv - adv_mean).astype(out_ref.dtype)


def _pick_batch_tiling(batch):
    """Pad-free, generation-aware tiling.

    v5e/v6e have one TensorCore -> a single grid step (no per-step overhead,
    no padded rows). v7x has two TensorCores -> two equal tiles so both cores
    get real work under dimension_semantics=("parallel",).
    """
    try:
        kind = jax.devices()[0].device_kind.lower()
    except Exception:  # pragma: no cover - defensive
        kind = ""
    two_cores = ("v7" in kind) or ("7x" in kind)
    n_tiles = 2 if (two_cores and batch >= 16) else 1
    tile_b = _round_up((batch + n_tiles - 1) // n_tiles, 8)   # sublane multiple
    return tile_b, n_tiles, tile_b * n_tiles


def dqn_forward(x, params):
    (w1, b1, w2, b2, wv1, bv1, wv2, bv2, wa, ba, alphas) = params

    # --- one-time parameter packing (plain JAX, outside the kernel) ----------
    w1c = w1.astype(jnp.float32)                                   # (F, H1)   f32
    w2c = w2.astype(WEIGHT_DTYPE)                                  # (H1, H1)  bf16
    wh = jnp.concatenate([wa, wv1], axis=1).astype(WEIGHT_DTYPE)   # (H1, HEAD) bf16, adv first
    bh = jnp.concatenate([ba, bv1], axis=1).astype(jnp.float32)    # (1, HEAD) f32
    b12 = jnp.concatenate([b1, b2], axis=0).astype(jnp.float32)    # (2, H1)   f32
    wv2_pad = jnp.concatenate(
        [jnp.zeros((1, N_ACTIONS), jnp.float32),
         wv2.reshape(1, H2).astype(jnp.float32)], axis=1)          # (1, HEAD) f32
    scalars = jnp.concatenate(
        [alphas.reshape(3), bv2.reshape(1)]).astype(jnp.float32)   # (4,) SMEM

    # --- batch tiling (no padded tiles) ---------------------------------------
    B = x.shape[0]
    tile_b, n_tiles, b_pad = _pick_batch_tiling(B)
    if b_pad != B:
        x = jnp.pad(x, ((0, b_pad - B), (0, 0)))

    const2 = lambda i: (0, 0)   # weights/biases: same block every step -> VMEM-resident

    flops = 2 * b_pad * (N_FEATURES * H1 + H1 * H1 + H1 * HEAD + HEAD) + 8 * b_pad * H1
    bytes_accessed = (b_pad * N_FEATURES * 4 + b_pad * N_ACTIONS * 4
                      + w1c.size * 4 + w2c.size * 2 + wh.size * 2
                      + (bh.size + b12.size + wv2_pad.size + scalars.size) * 4)

    out = pl.pallas_call(
        dqn_kernel,
        out_shape=jax.ShapeDtypeStruct((b_pad, N_ACTIONS), jnp.float32),
        grid=(n_tiles,),
        in_specs=[
            pl.BlockSpec(memory_space=pltpu.MemorySpace.SMEM),        # packed scalars
            pl.BlockSpec((tile_b, N_FEATURES), lambda i: (i, 0)),     # x tile
            pl.BlockSpec((N_FEATURES, H1), const2),                   # w1 (f32)
            pl.BlockSpec((H1, H1), const2),                           # w2 (bf16)
            pl.BlockSpec((H1, HEAD), const2),                         # fused head weight
            pl.BlockSpec((1, HEAD), const2),                          # wv2 (zero-padded)
            pl.BlockSpec((2, H1), const2),                            # b1/b2 packed
            pl.BlockSpec((1, HEAD), const2),                          # fused head bias
        ],
        out_specs=pl.BlockSpec((tile_b, N_ACTIONS), lambda i: (i, 0)),
        compiler_params=pltpu.CompilerParams(
            dimension_semantics=("parallel",),   # v7x: one tile per TensorCore
        ),
        cost_estimate=pl.CostEstimate(
            flops=int(flops), transcendentals=0, bytes_accessed=int(bytes_accessed)),
    )(scalars, x, w1c, w2c, wh, wv2_pad, b12, bh)

    return out[:B]


def init_params(key):
    """Deterministic synthetic init (PReLU slope = 0.25, PyTorch default)."""
    ks = jax.random.split(key, 10)

    def lin(kw, kb, fan_in, fan_out):
        # Uniform(-1/sqrt(fan_in), 1/sqrt(fan_in)) like torch.nn.Linear.
        bound = 1.0 / jnp.sqrt(jnp.float32(fan_in))
        w = jax.random.uniform(kw, (fan_in, fan_out), jnp.float32, -bound, bound)
        b = jax.random.uniform(kb, (1, fan_out), jnp.float32, -bound, bound)
        return w, b

    w1, b1 = lin(ks[0], ks[1], N_FEATURES, H1)
    w2, b2 = lin(ks[2], ks[3], H1, H1)
    wv1, bv1 = lin(ks[4], ks[5], H1, H2)
    wv2, bv2 = lin(ks[6], ks[7], H2, 1)
    wa, ba = lin(ks[8], ks[9], H1, N_ACTIONS)
    alphas = jnp.full((3,), 0.25, jnp.float32)   # PReLU slopes (trunk x2, value x1)
    return (w1, b1, w2, b2, wv1, bv1, wv2, bv2, wa, ba, alphas)


def reference_forward(x, params):
    """Plain-JAX dueling-DQN forward in the ORIGINAL (unfused) form.

    Precision mirrors the kernel's deployment choices (f32 first layer, bf16
    weights for the big matmuls with f32 accumulation) so the comparison
    isolates the kernel's structural transforms (head fusion, lane-aligned adv,
    VPU value reduce, in-kernel exact dueling mean).
    """
    (w1, b1, w2, b2, wv1, bv1, wv2, bv2, wa, ba, alphas) = params
    hp = jax.lax.Precision.HIGHEST

    def lin_bf16(a, w, b):
        return jnp.dot(a.astype(WEIGHT_DTYPE), w.astype(WEIGHT_DTYPE),
                       preferred_element_type=jnp.float32) + b

    h = _prelu(jnp.dot(x, w1, precision=hp, preferred_element_type=jnp.float32) + b1,
               alphas[0])
    h = _prelu(lin_bf16(h, w2, b2), alphas[1])
    v = _prelu(lin_bf16(h, wv1, bv1), alphas[2])
    value = jnp.dot(v, wv2, precision=hp, preferred_element_type=jnp.float32) + bv2
    adv = lin_bf16(h, wa, ba)
    return value + adv - jnp.mean(adv, axis=1, keepdims=True)


if __name__ == "__main__":
    key = jax.random.PRNGKey(0)
    kx, kp = jax.random.split(key)
    x = jax.random.normal(kx, (BATCH, N_FEATURES), jnp.float32)
    params = init_params(kp)

    out = jax.block_until_ready(jax.jit(dqn_forward)(x, params))
    ref = reference_forward(x, params)

    assert out.shape == (BATCH, N_ACTIONS)
    assert bool(jnp.all(jnp.isfinite(out)))
    max_diff = float(jnp.max(jnp.abs(out - ref)))
    assert jnp.allclose(out, ref, atol=2e-2, rtol=2e-2), (
        f"mismatch vs JAX reference, max abs diff = {max_diff}")
    print("KERNEL_OK")
</pallas_src>

<mosaic_0001>
module attributes {stable_mosaic.version = 11 : i64} {
  func.func @dqn_kernel(%arg0: i32, %arg1: memref<4xf32, #tpu.memory_space<smem>>, %arg2: memref<384x16xf32, #tpu.memory_space<vmem>>, %arg3: memref<16x128xf32, #tpu.memory_space<vmem>>, %arg4: memref<128x128xbf16, #tpu.memory_space<vmem>>, %arg5: memref<128x36xbf16, #tpu.memory_space<vmem>>, %arg6: memref<1x36xf32, #tpu.memory_space<vmem>>, %arg7: memref<2x128xf32, #tpu.memory_space<vmem>>, %arg8: memref<1x36xf32, #tpu.memory_space<vmem>>, %arg9: memref<384x4xf32, #tpu.memory_space<vmem>>) attributes {dimension_semantics = [#tpu.dimension_semantics<parallel>], iteration_bounds = array<i64: 1>, scalar_prefetch = 0 : i64, scratch_operands = 0 : i64, tpu.core_type = #tpu.core_type<tc>, window_params = [{transform_indices = @transform_0, window_bounds = array<i64: 4>}, {transform_indices = @transform_1, window_bounds = array<i64: 384, 16>}, {pipeline_mode = #tpu.pipeline_mode<synchronous>, transform_indices = @transform_2, window_bounds = array<i64: 16, 128>}, {pipeline_mode = #tpu.pipeline_mode<synchronous>, transform_indices = @transform_3, window_bounds = array<i64: 128, 128>}, {pipeline_mode = #tpu.pipeline_mode<synchronous>, transform_indices = @transform_4, window_bounds = array<i64: 128, 36>}, {pipeline_mode = #tpu.pipeline_mode<synchronous>, transform_indices = @transform_5, window_bounds = array<i64: 1, 36>}, {pipeline_mode = #tpu.pipeline_mode<synchronous>, transform_indices = @transform_6, window_bounds = array<i64: 2, 128>}, {pipeline_mode = #tpu.pipeline_mode<synchronous>, transform_indices = @transform_7, window_bounds = array<i64: 1, 36>}, {transform_indices = @transform_8, window_bounds = array<i64: 384, 4>}]} {
    %c0 = arith.constant 0 : index
    %0 = memref.load %arg1[%c0] : memref<4xf32, #tpu.memory_space<smem>>
    %c1 = arith.constant 1 : index
    %1 = memref.load %arg1[%c1] : memref<4xf32, #tpu.memory_space<smem>>
    %c2 = arith.constant 2 : index
    %2 = memref.load %arg1[%c2] : memref<4xf32, #tpu.memory_space<smem>>
    %c3 = arith.constant 3 : index
    %3 = memref.load %arg1[%c3] : memref<4xf32, #tpu.memory_space<smem>>
    %c0_0 = arith.constant 0 : index
    %c0_1 = arith.constant 0 : index
    %4 = vector.load %arg7[%c0_0, %c0_1] : memref<2x128xf32, #tpu.memory_space<vmem>>, vector<2x128xf32>
    %c0_2 = arith.constant 0 : index
    %c0_3 = arith.constant 0 : index
    %5 = vector.load %arg2[%c0_2, %c0_3] : memref<384x16xf32, #tpu.memory_space<vmem>>, vector<384x16xf32>
    %c0_4 = arith.constant 0 : index
    %c0_5 = arith.constant 0 : index
    %6 = vector.load %arg3[%c0_4, %c0_5] : memref<16x128xf32, #tpu.memory_space<vmem>>, vector<16x128xf32>
    %cst = arith.constant dense<0.000000e+00> : vector<384x128xf32>
    %7 = tpu.matmul %5, %6, %cst {dimension_numbers = #tpu.dot_dimension_numbers<[1], [0], [0], [1], [0, 0, 1, 1], [], []>} : vector<384x16xf32>, vector<16x128xf32>, vector<384x128xf32> -> vector<384x128xf32>
    %8 = vector.extract_strided_slice %4 {offsets = [0, 0], sizes = [1, 128], strides = [1, 1]} : vector<2x128xf32> to vector<1x128xf32>
    %9 = vector.broadcast %8 : vector<1x128xf32> to vector<384x128xf32>
    %10 = arith.addf %7, %9 : vector<384x128xf32>
    %cst_6 = arith.constant 0.000000e+00 : f32
    %11 = vector.broadcast %cst_6 : f32 to vector<384x128xf32>
    %12 = arith.cmpf oge, %10, %11 : vector<384x128xf32>
    %13 = vector.broadcast %0 : f32 to vector<384x128xf32>
    %14 = arith.mulf %13, %10 : vector<384x128xf32>
    %15 = arith.select %12, %10, %14 : vector<384x128xi1>, vector<384x128xf32>
    %16 = arith.truncf %15 : vector<384x128xf32> to vector<384x128xbf16>
    %c0_7 = arith.constant 0 : index
    %c0_8 = arith.constant 0 : index
    %17 = vector.load %arg4[%c0_7, %c0_8] : memref<128x128xbf16, #tpu.memory_space<vmem>>, vector<128x128xbf16>
    %cst_9 = arith.constant dense<0.000000e+00> : vector<384x128xf32>
    %18 = tpu.matmul %16, %17, %cst_9 {dimension_numbers = #tpu.dot_dimension_numbers<[1], [0], [0], [1], [0, 0, 1, 1], [], []>} : vector<384x128xbf16>, vector<128x128xbf16>, vector<384x128xf32> -> vector<384x128xf32>
    %19 = vector.extract_strided_slice %4 {offsets = [1, 0], sizes = [1, 128], strides = [1, 1]} : vector<2x128xf32> to vector<1x128xf32>
    %20 = vector.broadcast %19 : vector<1x128xf32> to vector<384x128xf32>
    %21 = arith.addf %18, %20 : vector<384x128xf32>
    %cst_10 = arith.constant 0.000000e+00 : f32
    %22 = vector.broadcast %cst_10 : f32 to vector<384x128xf32>
    %23 = arith.cmpf oge, %21, %22 : vector<384x128xf32>
    %24 = vector.broadcast %1 : f32 to vector<384x128xf32>
    %25 = arith.mulf %24, %21 : vector<384x128xf32>
    %26 = arith.select %23, %21, %25 : vector<384x128xi1>, vector<384x128xf32>
    %27 = arith.truncf %26 : vector<384x128xf32> to vector<384x128xbf16>
    %c0_11 = arith.constant 0 : index
    %c0_12 = arith.constant 0 : index
    %28 = vector.load %arg5[%c0_11, %c0_12] : memref<128x36xbf16, #tpu.memory_space<vmem>>, vector<128x36xbf16>
    %cst_13 = arith.constant dense<0.000000e+00> : vector<384x36xf32>
    %29 = tpu.matmul %27, %28, %cst_13 {dimension_numbers = #tpu.dot_dimension_numbers<[1], [0], [0], [1], [0, 0, 1, 1], [], []>} : vector<384x128xbf16>, vector<128x36xbf16>, vector<384x36xf32> -> vector<384x36xf32>
    %c0_14 = arith.constant 0 : index
    %c0_15 = arith.constant 0 : index
    %30 = vector.load %arg8[%c0_14, %c0_15] : memref<1x36xf32, #tpu.memory_space<vmem>>, vector<1x36xf32>
    %31 = vector.broadcast %30 : vector<1x36xf32> to vector<384x36xf32>
    %32 = arith.addf %29, %31 : vector<384x36xf32>
    %33 = vector.extract_strided_slice %32 {offsets = [0, 0], sizes = [384, 4], strides = [1, 1]} : vector<384x36xf32> to vector<384x4xf32>
    %cst_16 = arith.constant 0.000000e+00 : f32
    %34 = vector.broadcast %cst_16 : f32 to vector<384x36xf32>
    %35 = arith.cmpf oge, %32, %34 : vector<384x36xf32>
    %36 = vector.broadcast %2 : f32 to vector<384x36xf32>
    %37 = arith.mulf %36, %32 : vector<384x36xf32>
    %38 = arith.select %35, %32, %37 : vector<384x36xi1>, vector<384x36xf32>
    %c0_17 = arith.constant 0 : index
    %c0_18 = arith.constant 0 : index
    %39 = vector.load %arg6[%c0_17, %c0_18] : memref<1x36xf32, #tpu.memory_space<vmem>>, vector<1x36xf32>
    %40 = vector.broadcast %39 : vector<1x36xf32> to vector<384x36xf32>
    %41 = arith.mulf %38, %40 : vector<384x36xf32>
    %cst_19 = arith.constant dense<0.000000e+00> : vector<384xf32>
    %42 = vector.multi_reduction <add>, %41, %cst_19 [1] : vector<384x36xf32> to vector<384xf32>
    %43 = vector.shape_cast %42 : vector<384xf32> to vector<384x1xf32>
    %44 = vector.broadcast %3 : f32 to vector<384x1xf32>
    %45 = arith.addf %43, %44 : vector<384x1xf32>
    %cst_20 = arith.constant dense<0.000000e+00> : vector<384xf32>
    %46 = vector.multi_reduction <add>, %33, %cst_20 [1] : vector<384x4xf32> to vector<384xf32>
    %47 = vector.shape_cast %46 : vector<384xf32> to vector<384x1xf32>
    %cst_21 = arith.constant 4.000000e+00 : f32
    %48 = vector.broadcast %cst_21 : f32 to vector<384x1xf32>
    %49 = arith.divf %47, %48 : vector<384x1xf32>
    %50 = vector.broadcast %45 : vector<384x1xf32> to vector<384x4xf32>
    %51 = arith.addf %50, %33 : vector<384x4xf32>
    %52 = vector.broadcast %49 : vector<384x1xf32> to vector<384x4xf32>
    %53 = arith.subf %51, %52 : vector<384x4xf32>
    %c0_22 = arith.constant 0 : index
    %c0_23 = arith.constant 0 : index
    %54 = vector.load %arg9[%c0_22, %c0_23] : memref<384x4xf32, #tpu.memory_space<vmem>>, vector<384x4xf32>
    tpu.vector_store %arg9[%c0_22, %c0_23], %53 {strides = array<i32>} : memref<384x4xf32, #tpu.memory_space<vmem>>, vector<384x4xf32>,
    return
  }
  func.func @transform_0(%arg0: i32) -> i32 {
    %c0_i32 = arith.constant 0 : i32
    %c0_i32_0 = arith.constant 0 : i32
    return %c0_i32 : i32
  }
  func.func @transform_1(%arg0: i32) -> (i32, i32) {
    %c0_i32 = arith.constant 0 : i32
    %c0_i32_0 = arith.constant 0 : i32
    return %arg0, %c0_i32 : i32, i32
  }
  func.func @transform_2(%arg0: i32) -> (i32, i32) {
    %c0_i32 = arith.constant 0 : i32
    %c0_i32_0 = arith.constant 0 : i32
    %c0_i32_1 = arith.constant 0 : i32
    return %c0_i32, %c0_i32_0 : i32, i32
  }
  func.func @transform_3(%arg0: i32) -> (i32, i32) {
    %c0_i32 = arith.constant 0 : i32
    %c0_i32_0 = arith.constant 0 : i32
    %c0_i32_1 = arith.constant 0 : i32
    return %c0_i32, %c0_i32_0 : i32, i32
  }
  func.func @transform_4(%arg0: i32) -> (i32, i32) {
    %c0_i32 = arith.constant 0 : i32
    %c0_i32_0 = arith.constant 0 : i32
    %c0_i32_1 = arith.constant 0 : i32
    return %c0_i32, %c0_i32_0 : i32, i32
  }
  func.func @transform_5(%arg0: i32) -> (i32, i32) {
    %c0_i32 = arith.constant 0 : i32
    %c0_i32_0 = arith.constant 0 : i32
    %c0_i32_1 = arith.constant 0 : i32
    return %c0_i32, %c0_i32_0 : i32, i32
  }
  func.func @transform_6(%arg0: i32) -> (i32, i32) {
    %c0_i32 = arith.constant 0 : i32
    %c0_i32_0 = arith.constant 0 : i32
    %c0_i32_1 = arith.constant 0 : i32
    return %c0_i32, %c0_i32_0 : i32, i32
  }
  func.func @transform_7(%arg0: i32) -> (i32, i32) {
    %c0_i32 = arith.constant 0 : i32
    %c0_i32_0 = arith.constant 0 : i32
    %c0_i32_1 = arith.constant 0 : i32
    return %c0_i32, %c0_i32_0 : i32, i32
  }
  func.func @transform_8(%arg0: i32) -> (i32, i32) {
    %c0_i32 = arith.constant 0 : i32
    %c0_i32_0 = arith.constant 0 : i32
    return %arg0, %c0_i32 : i32, i32
  }
}

</mosaic_0001>

<bundles_post_ra>
// kernel: dqn_forward.1
= control target key start
LH: loop header
LB: loop body
LE: loop exit
PB: predicated region body
PF: predicated region fallthrough
CT: control target
= control target key end

     0   :  { %13 = vsyncpa [#allocation3], 0  ;;  %s4154_s0 = inlined_call_operand.vmem [shape: f32[4], index: 0, kind: input, shape index: {}]   ;;  %s4155_s1 = inlined_call_operand.vmem [shape: f32[384,16], index: 1, kind: input, shape index: {}]   ;;  %s4156_s2 = inlined_call_operand.vmem [shape: f32[16,128], index: 2, kind: input, shape index: {}]   ;;  %s4157_s3 = inlined_call_operand.vmem [shape: bf16[128,128], index: 3, kind: input, shape index: {}]   ;;  %s4158_s4 = inlined_call_operand.vmem [shape: bf16[128,36], index: 4, kind: input, shape index: {}]   ;;  %s4159_s5 = inlined_call_operand.vmem [shape: f32[1,36], index: 5, kind: input, shape index: {}]   ;;  %s4160_s6 = inlined_call_operand.vmem [shape: f32[2,128], index: 6, kind: input, shape index: {}]   ;;  %s4161_s7 = inlined_call_operand.vmem [shape: f32[1,36], index: 7, kind: input, shape index: {}]   ;;  %s4162_s8 = inlined_call_operand.vmem [shape: f32[384,4], index: 8, kind: output, shape index: {}]  }
   0x1   :  { %s20_s29 = sshll.u32 %s4154_s0, 4  ;;  %s21_s29 = int_to_ptr.vmem [resolvable:$true] %s20_s29 }
   0x2   :  { %s2627_s30 = scalar_lea.vmem %s21_s29, 16  ;;  %p2632_p1 = scmp.lt.s32.totalorder %s21_s29, %s21_s29 }
   0x3   :  { %p2628_p0 = scmp.ne.s32.totalorder %s21_s29, %s2627_s30  ;;  %p2633_p2 = scmp.lt.s32.totalorder %s2627_s30, %s2627_s30 }
   0x5   :  { %p2634_p3 = por %p2633_p2, %p2632_p1 }
   0x7   :  { %p2635_p4 = pnand %p2634_p3, %p2628_p0 }
   0x9   :  { %2638 = shalt.err (!%p2635_p4)
}
   0xa   :  { %s2641_s9 = smov [#allocation2]  }
   0xb   :  { %23 = dma.vmem_to_smem %s21_s29, 16, %s2641_s9, [#allocation3]  }
   0xc   :  { %2639 = dma.done.wait [#allocation3], 16  }
   0xd   :  { %2640 = vsyncadd [#allocation3], 4294967280 }
   0xe   :  { %41 = sfence }
   0xf   :  { %v96_v0 = vld [vmem:[%s4156_s2] sm:$0xff]  ;;  %v97_v1 = vld [vmem:[%s4156_s2 + $0x8] sm:$0xff]  ;;  %vm102_vm0 = vcmask 130048   ;;  %v50_v5 = vld [vmem:[%s4155_s1 + $0x10] sm:$0xff]  ;;  %v98_v63 = vlaneseq  ;;  %s43_s15 = sld [smem:[#allocation2]]  ;;  %s2216_s20 = sld [smem:[#allocation2 + $0x1]] }
  0x10   :  { %v48_v2 = vld [vmem:[%s4155_s1] sm:$0xff]  ;;  %v2603_v3 = vpack.c.bf16 %v97_v1, %v96_v0  ;;  %v49_v4 = vld [vmem:[%s4155_s1 + $0x8] sm:$0xff]  ;;  %v51_v6 = vld [vmem:[%s4155_s1 + $0x18] sm:$0xff]  ;;  %s2218_s24 = sld [smem:[#allocation2 + $0x3]] }
  0x11   :  { %2403 = vmatprep.mubr.msk.f32.mxu0 %vm102_vm0, %v48_v2  ;;  %v72_v7 = vld [vmem:[%s4155_s1 + $0xc0] sm:$0xff]  ;;  %v73_v9 = vld [vmem:[%s4155_s1 + $0xc8] sm:$0xff]  ;;  %v74_v10 = vld [vmem:[%s4155_s1 + $0xd0] sm:$0xff]  ;;  %v2927_v1 = vshrl.u32 %v98_v63, 7 }
  0x12   :  { %2604 = vmatprep.subr.bf16.mxu0 %v2603_v3  ;;  %2607 = vmatprep.subr.bf16.mxu1 %v2603_v3  ;;  %v52_v8 = vld [vmem:[%s4155_s1 + $0x20] sm:$0xff]  ;;  %v75_v11 = vld [vmem:[%s4155_s1 + $0xd8] sm:$0xff]  ;;  %v53_v12 = vld [vmem:[%s4155_s1 + $0x28] sm:$0xff] }
  0x13   :  { %2606 = vmatpush3.bf16.msra.mxu0 %v2603_v3  ;;  %2608 = vmatpush3.bf16.msra.mxu1 %v2603_v3  ;;  %v76_v13 = vld [vmem:[%s4155_s1 + $0xe0] sm:$0xff]  ;;  %v54_v14 = vld [vmem:[%s4155_s1 + $0x30] sm:$0xff]  ;;  %v55_v15 = vld [vmem:[%s4155_s1 + $0x38] sm:$0xff]  ;;  %v100_v3 = vsub.s32 0, %v2927_v1 }
  0x14   :  { %2439 = vmatprep.mubr.msk.f32.mxu1 %vm102_vm0, %v72_v7  ;;  %v77_v16 = vld [vmem:[%s4155_s1 + $0xe8] sm:$0xff]  ;;  %v56_v17 = vld [vmem:[%s4155_s1 + $0x40] sm:$0xff]  ;;  %v78_v18 = vld [vmem:[%s4155_s1 + $0xf0] sm:$0xff] }
  0x15   :  { %v2610_v19 = vld [vmem:[%s4157_s3] sm:$0xff]   ;;  %v57_v20 = vld [vmem:[%s4155_s1 + $0x48] sm:$0xff]  ;;  %v58_v22 = vld [vmem:[%s4155_s1 + $0x50] sm:$0xff] }
  0x16   :  { %2404 = vmatmul.mubr.msk.f32.vlgmr.msra.gmra.mrb[0].mxu0 %vm102_vm0, %v49_v4  ;;  %2440 = vmatmul.mubr.msk.f32.vlgmr.msra.gmra.mrb[0].mxu1 %vm102_vm0, %v73_v9  ;;  %v2611_v21 = vld [vmem:[%s4157_s3 + $0x8] sm:$0xff]   ;;  %v79_v23 = vld [vmem:[%s4155_s1 + $0xf8] sm:$0xff]  ;;  %v80_v24 = vld [vmem:[%s4155_s1 + $0x100] sm:$0xff] }
  0x17   :  { %2406 = vmatprep.mubr.msk.f32.mxu0 %vm102_vm0, %v50_v5  ;;  %2442 = vmatprep.mubr.msk.f32.mxu1 %vm102_vm0, %v74_v10  ;;  %v81_v25 = vld [vmem:[%s4155_s1 + $0x108] sm:$0xff]  ;;  %v59_v26 = vld [vmem:[%s4155_s1 + $0x58] sm:$0xff]  ;;  %v82_v27 = vld [vmem:[%s4155_s1 + $0x110] sm:$0xff] }
  0x18   :  { %2475 = vmatprep.subr.bf16.mxu1 %v2610_v19  ;;  %v2612_v28 = vld [vmem:[%s4157_s3 + $0x10] sm:$0xff]   ;;  %v60_v29 = vld [vmem:[%s4155_s1 + $0x60] sm:$0xff]  ;;  %v2613_v30 = vld [vmem:[%s4157_s3 + $0x18] sm:$0xff]  }
  0x19   :  { %2476 = vmatpush3.bf16.msra.mxu1 %v2610_v19  ;;  %v83_v31 = vld [vmem:[%s4155_s1 + $0x118] sm:$0xff]  ;;  %v61_v32 = vld [vmem:[%s4155_s1 + $0x68] sm:$0xff]  ;;  %v84_v33 = vld [vmem:[%s4155_s1 + $0x120] sm:$0xff] }
  0x1a   :  { %2407 = vmatmul.mubr.msk.f32.gmra.mrb[2].mxu0 %vm102_vm0, %v51_v6  ;;  %2443 = vmatmul.mubr.msk.f32.gmra.mrb[2].mxu1 %vm102_vm0, %v75_v11  ;;  %v62_v34 = vld [vmem:[%s4155_s1 + $0x70] sm:$0xff]  ;;  %v2614_v35 = vld [vmem:[%s4157_s3 + $0x20] sm:$0xff]   ;;  %v85_v36 = vld [vmem:[%s4155_s1 + $0x128] sm:$0xff] }
  0x1b   :  { %2409 = vmatprep.mubr.msk.f32.mxu0 %vm102_vm0, %v52_v8  ;;  %2445 = vmatprep.mubr.msk.f32.mxu1 %vm102_vm0, %v76_v13  ;;  %v63_v37 = vld [vmem:[%s4155_s1 + $0x78] sm:$0xff]  ;;  %v86_v38 = vld [vmem:[%s4155_s1 + $0x130] sm:$0xff]  ;;  %v64_v39 = vld [vmem:[%s4155_s1 + $0x80] sm:$0xff]  ;;  %v2944_v8 = vstv %s43_s15 }
  0x1c   :  { %2477 = vmatprep.subr.bf16.mxu1 %v2611_v21  ;;  %v2615_v40 = vld [vmem:[%s4157_s3 + $0x28] sm:$0xff]   ;;  %v87_v41 = vld [vmem:[%s4155_s1 + $0x138] sm:$0xff]  ;;  %v88_v43 = vld [vmem:[%s4155_s1 + $0x140] sm:$0xff] }
  0x1d   :  { %2478 = vmatpush3.bf16.msra.mxu1 %v2611_v21  ;;  %v65_v42 = vld [vmem:[%s4155_s1 + $0x88] sm:$0xff]  ;;  %v66_v44 = vld [vmem:[%s4155_s1 + $0x90] sm:$0xff]  ;;  %v67_v46 = vld [vmem:[%s4155_s1 + $0x98] sm:$0xff] }
  0x1e   :  { %2410 = vmatmul.mubr.msk.f32.gmra.mrb[4].mxu0 %vm102_vm0, %v53_v12  ;;  %2446 = vmatmul.mubr.msk.f32.gmra.mrb[4].mxu1 %vm102_vm0, %v77_v16  ;;  %v89_v45 = vld [vmem:[%s4155_s1 + $0x148] sm:$0xff]  ;;  %v90_v47 = vld [vmem:[%s4155_s1 + $0x150] sm:$0xff]  ;;  %v68_v48 = vld [vmem:[%s4155_s1 + $0xa0] sm:$0xff] }
  0x1f   :  { %2412 = vmatprep.mubr.msk.f32.mxu0 %vm102_vm0, %v54_v14  ;;  %2448 = vmatprep.mubr.msk.f32.mxu1 %vm102_vm0, %v78_v18  ;;  %v91_v49 = vld [vmem:[%s4155_s1 + $0x158] sm:$0xff]  ;;  %v69_v50 = vld [vmem:[%s4155_s1 + $0xa8] sm:$0xff]  ;;  %v92_v51 = vld [vmem:[%s4155_s1 + $0x160] sm:$0xff] }
  0x20   :  { %2479 = vmatprep.subr.bf16.mxu1 %v2612_v28  ;;  %v70_v52 = vld [vmem:[%s4155_s1 + $0xb0] sm:$0xff]  ;;  %v93_v53 = vld [vmem:[%s4155_s1 + $0x168] sm:$0xff]  ;;  %v71_v54 = vld [vmem:[%s4155_s1 + $0xb8] sm:$0xff] }
  0x21   :  { %2480 = vmatpush3.bf16.msra.mxu1 %v2612_v28  ;;  %v94_v55 = vld [vmem:[%s4155_s1 + $0x170] sm:$0xff]  ;;  %v95_v56 = vld [vmem:[%s4155_s1 + $0x178] sm:$0xff]  ;;  %v2618_v59 = vld [vmem:[%s4158_s4] sm:$0xff]  }
  0x22   :  { %2413 = vmatmul.mubr.msk.f32.gmra.mrb[6].mxu0 %vm102_vm0, %v55_v15  ;;  %2449 = vmatmul.mubr.msk.f32.gmra.mrb[6].mxu1 %vm102_vm0, %v79_v23  ;;  %v2616_v57 = vld [vmem:[%s4157_s3 + $0x30] sm:$0xff]   ;;  %v2617_v58 = vld [vmem:[%s4157_s3 + $0x38] sm:$0xff]   ;;  %v2619_v60 = vld [vmem:[%s4158_s4 + $0x8] sm:$0xff]  }
  0x23   :  { %2415 = vmatprep.mubr.msk.f32.mxu0 %vm102_vm0, %v56_v17  ;;  %2451 = vmatprep.mubr.msk.f32.mxu1 %vm102_vm0, %v80_v24  ;;  %v2620_v61 = vld [vmem:[%s4158_s4 + $0x10] sm:$0xff]   ;;  %v2621_v62 = vld [vmem:[%s4158_s4 + $0x18] sm:$0xff]   ;;  %v2622_v0 = vld [vmem:[%s4158_s4 + $0x20] sm:$0xff]  }
  0x24   :  { %2481 = vmatprep.subr.bf16.mxu1 %v2613_v30  ;;  %2539 = vmatprep.subr.bf16.mxu0 %v2618_v59  ;;  %v2623_v2 = vld [vmem:[%s4158_s4 + $0x28] sm:$0xff]   ;;  %v2624_v4 = vld [vmem:[%s4158_s4 + $0x30] sm:$0xff]   ;;  %v2939_v5 = vld [vmem:[%s4160_s6] sm:$0x3] }
  0x25   :  { %2482 = vmatpush3.bf16.msra.mxu1 %v2613_v30  ;;  %2540 = vmatpush3.bf16.msra.mxu0 %v2618_v59  ;;  %v2942_v6 = vrot.slane %v2939_v5, %v100_v3 }
  0x26   :  { %2416 = vmatmul.mubr.msk.f32.gmra.mrb[8].mxu0 %vm102_vm0, %v57_v20  ;;  %2452 = vmatmul.mubr.msk.f32.gmra.mrb[8].mxu1 %vm102_vm0, %v81_v25 }
  0x27   :  { %2418 = vmatprep.mubr.msk.f32.mxu0 %vm102_vm0, %v58_v22  ;;  %2454 = vmatprep.mubr.msk.f32.mxu1 %vm102_vm0, %v82_v27 }
  0x28   :  { %2483 = vmatprep.subr.bf16.mxu1 %v2614_v35  ;;  %2541 = vmatprep.subr.bf16.mxu0 %v2619_v60 }
  0x29   :  { %2484 = vmatpush3.bf16.msra.mxu1 %v2614_v35  ;;  %2542 = vmatpush3.bf16.msra.mxu0 %v2619_v60 }
  0x2a   :  { %2419 = vmatmul.mubr.msk.f32.gmra.mrb[10].mxu0 %vm102_vm0, %v59_v26  ;;  %2455 = vmatmul.mubr.msk.f32.gmra.mrb[10].mxu1 %vm102_vm0, %v83_v31 }
  0x2b   :  { %2421 = vmatprep.mubr.msk.f32.mxu0 %vm102_vm0, %v60_v29  ;;  %2457 = vmatprep.mubr.msk.f32.mxu1 %vm102_vm0, %v84_v33 }
  0x2c   :  { %2485 = vmatprep.subr.bf16.mxu1 %v2615_v40  ;;  %2543 = vmatprep.subr.bf16.mxu0 %v2620_v61 }
  0x2d   :  { %2486 = vmatpush3.bf16.msra.mxu1 %v2615_v40  ;;  %2544 = vmatpush3.bf16.msra.mxu0 %v2620_v61 }
  0x2e   :  { %2422 = vmatmul.mubr.msk.f32.gmra.mrb[12].mxu0 %vm102_vm0, %v61_v32  ;;  %2458 = vmatmul.mubr.msk.f32.gmra.mrb[12].mxu1 %vm102_vm0, %v85_v36 }
  0x2f   :  { %2424 = vmatprep.mubr.msk.f32.mxu0 %vm102_vm0, %v62_v34  ;;  %2460 = vmatprep.mubr.msk.f32.mxu1 %vm102_vm0, %v86_v38 }
  0x30   :  { %2487 = vmatprep.subr.bf16.mxu1 %v2616_v57  ;;  %2545 = vmatprep.subr.bf16.mxu0 %v2621_v62 }
  0x31   :  { %2488 = vmatpush3.bf16.msra.mxu1 %v2616_v57  ;;  %2546 = vmatpush3.bf16.msra.mxu0 %v2621_v62 }
  0x32   :  { %2425 = vmatmul.mubr.msk.f32.gmra.mrb[14].mxu0 %vm102_vm0, %v63_v37  ;;  %2461 = vmatmul.mubr.msk.f32.gmra.mrb[14].mxu1 %vm102_vm0, %v87_v41 }
  0x33   :  { %2427 = vmatprep.mubr.msk.f32.mxu0 %vm102_vm0, %v64_v39  ;;  %2463 = vmatprep.mubr.msk.f32.mxu1 %vm102_vm0, %v88_v43 }
  0x34   :  { %2489 = vmatprep.subr.bf16.mxu1 %v2617_v58  ;;  %2547 = vmatprep.subr.bf16.mxu0 %v2622_v0 }
  0x35   :  { %2490 = vmatpush3.bf16.msra.mxu1 %v2617_v58  ;;  %2548 = vmatpush3.bf16.msra.mxu0 %v2622_v0 }
  0x36   :  { %2428 = vmatmul.mubr.msk.f32.gmra.mrb[16].mxu0 %vm102_vm0, %v65_v42  ;;  %2464 = vmatmul.mubr.msk.f32.gmra.mrb[16].mxu1 %vm102_vm0, %v89_v45 }
  0x37   :  { %2430 = vmatprep.mubr.msk.f32.mxu0 %vm102_vm0, %v66_v44  ;;  %2466 = vmatprep.mubr.msk.f32.mxu1 %vm102_vm0, %v90_v47 }
  0x38   :  { %2549 = vmatprep.subr.bf16.mxu0 %v2623_v2 }
  0x39   :  { %2550 = vmatpush3.bf16.msra.mxu0 %v2623_v2 }
  0x3a   :  { %2431 = vmatmul.mubr.msk.f32.gmra.mrb[18].mxu0 %vm102_vm0, %v67_v46  ;;  %2467 = vmatmul.mubr.msk.f32.gmra.mrb[18].mxu1 %vm102_vm0, %v91_v49 }
  0x3b   :  { %2433 = vmatprep.mubr.msk.f32.mxu0 %vm102_vm0, %v68_v48  ;;  %2469 = vmatprep.mubr.msk.f32.mxu1 %vm102_vm0, %v92_v51 }
  0x3c   :  { %2551 = vmatprep.subr.bf16.mxu0 %v2624_v4 }
  0x3d   :  { %2552 = vmatpush3.bf16.msra.mxu0 %v2624_v4 }
  0x3e   :  { %2434 = vmatmul.mubr.msk.f32.gmra.mrb[20].mxu0 %vm102_vm0, %v69_v50  ;;  %2470 = vmatmul.mubr.msk.f32.gmra.mrb[20].mxu1 %vm102_vm0, %v93_v53 }
  0x3f   :  { %2436 = vmatprep.mubr.msk.f32.mxu0 %vm102_vm0, %v70_v52  ;;  %2472 = vmatprep.mubr.msk.f32.mxu1 %vm102_vm0, %v94_v55 }
  0x42   :  { %2437 = vmatmul.mubr.msk.f32.gmra.mrb[22].mxu0 %vm102_vm0, %v71_v54  ;;  %2473 = vmatmul.mubr.msk.f32.gmra.mrb[22].mxu1 %vm102_vm0, %v95_v56 }
  0xe9   :  { %v2405_v7 = vpop.f32.mrb[0].mxu0  ;;  %v2441_v13 = vpop.f32.mrb[0].mxu1 }
  0xea   :  { %v319_v9 = vadd.f32 %v2405_v7, %v2942_v6  ;;  %v313_v10 = vpop.f32.mrb[1].mxu0  ;;  %v439_v16 = vadd.f32 %v2441_v13, %v2942_v6  ;;  %v433_v17 = vpop.f32.mrb[1].mxu1 }
  0xeb   :  { %v314_v11 = vadd.f32 %v313_v10, %v2942_v6  ;;  %v434_v21 = vadd.f32 %v433_v17, %v2942_v6 }
  0xec   :  { %vm553_vm1 = vcmp.ge.f32.partialorder %v319_v9, 0.0  ;;  %v602_v12 = vmul.f32 %v2944_v8, %v319_v9  ;;  %vm577_vm3 = vcmp.ge.f32.partialorder %v439_v16, 0.0  ;;  %v626_v24 = vmul.f32 %v2944_v8, %v439_v16 }
  0xed   :  { %vm552_vm2 = vcmp.ge.f32.partialorder %v314_v11, 0.0  ;;  %v601_v14 = vmul.f32 %v2944_v8, %v314_v11  ;;  %v2408_v15 = vpop.f32.mrb[2].mxu0  ;;  %vm576_vm5 = vcmp.ge.f32.partialorder %v434_v21, 0.0  ;;  %v2444_v27 = vpop.f32.mrb[2].mxu1  ;;  %v625_v30 = vmul.f32 %v2944_v8, %v434_v21 }
  0xee   :  { %v329_v18 = vadd.f32 %v2408_v15, %v2942_v6  ;;  %v323_v19 = vpop.f32.mrb[3].mxu0  ;;  %v650_v20 = vsel %vm553_vm1, %v319_v9, %v602_v12  ;;  %v449_v31 = vadd.f32 %v2444_v27, %v2942_v6  ;;  %v443_v32 = vpop.f32.mrb[3].mxu1  ;;  %v2962_v37 = vsel %vm577_vm3, %v439_v16, %v626_v24 }
  0xef   :  { %v324_v22 = vadd.f32 %v323_v19, %v2942_v6  ;;  %v649_v23 = vsel %vm552_vm2, %v314_v11, %v601_v14  ;;  %v444_v36 = vadd.f32 %v443_v32, %v2942_v6  ;;  %v2970_v47 = vsel %vm576_vm5, %v434_v21, %v625_v30 }
  0xf0   :  { %vm555_vm4 = vcmp.ge.f32.partialorder %v329_v18, 0.0  ;;  %v604_v25 = vmul.f32 %v2944_v8, %v329_v18  ;;  %v697_v26 = vpack.c.bf16 %v650_v20, %v649_v23  ;;  %vm579_vm7 = vcmp.ge.f32.partialorder %v449_v31, 0.0 }
  0xf1   :  { %vm554_vm6 = vcmp.ge.f32.partialorder %v324_v22, 0.0  ;;  %v603_v28 = vmul.f32 %v2944_v8, %v324_v22  ;;  %v2411_v29 = vpop.f32.mrb[4].mxu0  ;;  %v628_v40 = vmul.f32 %v2944_v8, %v449_v31  ;;  %vm578_vm9 = vcmp.ge.f32.partialorder %v444_v36, 0.0  ;;  %v2447_v43 = vpop.f32.mrb[4].mxu1 }
  0xf2   :  { %v652_v33 = vsel %vm555_vm4, %v329_v18, %v604_v25  ;;  %2491 = vmatprep.mubr.bf16.mxu1 %v697_v26  ;;  %v339_v34 = vadd.f32 %v2411_v29, %v2942_v6  ;;  %v333_v35 = vpop.f32.mrb[5].mxu0  ;;  %v627_v46 = vmul.f32 %v2944_v8, %v444_v36  ;;  %v453_v48 = vpop.f32.mrb[5].mxu1  ;;  %v709_v52 = vpack.c.bf16 %v2962_v37, %v2970_v47 }
  0xf3   :  { %v651_v38 = vsel %vm554_vm6, %v324_v22, %v603_v28  ;;  %v334_v39 = vadd.f32 %v333_v35, %v2942_v6  ;;  %v2976_v53 = vsel %vm579_vm7, %v449_v31, %v628_v40  ;;  %v459_v57 = vadd.f32 %v2447_v43, %v2942_v6 }
  0xf4   :  { %v698_v41 = vpack.c.bf16 %v652_v33, %v651_v38  ;;  %vm557_vm8 = vcmp.ge.f32.partialorder %v339_v34, 0.0  ;;  %v606_v42 = vmul.f32 %v2944_v8, %v339_v34  ;;  %v2980_v56 = vsel %vm578_vm9, %v444_v36, %v627_v46 }
  0xf5   :  { %vm556_vm10 = vcmp.ge.f32.partialorder %v334_v39, 0.0  ;;  %v605_v44 = vmul.f32 %v2944_v8, %v334_v39  ;;  %v2414_v45 = vpop.f32.mrb[6].mxu0  ;;  %v710_v60 = vpack.c.bf16 %v2976_v53, %v2980_v56  ;;  %v2450_v61 = vpop.f32.mrb[6].mxu1  ;;  %vm581_vm13 = vcmp.ge.f32.partialorder %v459_v57, 0.0 }
  0xf6   :  { %v349_v49 = vadd.f32 %v2414_v45, %v2942_v6  ;;  %v343_v50 = vpop.f32.mrb[7].mxu0  ;;  %2492 = vmatmul.mubr.bf16.vlgmr.msra.gmra.mrb[24].mxu1 %v698_v41  ;;  %v654_v51 = vsel %vm557_vm8, %v339_v34, %v606_v42  ;;  %v630_v0 = vmul.f32 %v2944_v8, %v459_v57  ;;  %v463_v2 = vpop.f32.mrb[7].mxu1  ;;  %v454_v9 = vadd.f32 %v453_v48, %v2942_v6 }
  0xf7   :  { %v344_v54 = vadd.f32 %v343_v50, %v2942_v6  ;;  %v653_v55 = vsel %vm556_vm10, %v334_v39, %v605_v44  ;;  %v469_v10 = vadd.f32 %v2450_v61, %v2942_v6  ;;  %v464_v13 = vadd.f32 %v463_v2, %v2942_v6 }
  0xf8   :  { %vm559_vm11 = vcmp.ge.f32.partialorder %v349_v49, 0.0  ;;  %v608_v58 = vmul.f32 %v2944_v8, %v349_v49  ;;  %v699_v59 = vpack.c.bf16 %v654_v51, %v653_v55  ;;  %v2993_v14 = vsel %vm581_vm13, %v459_v57, %v630_v0 }
  0xf9   :  { %vm558_vm12 = vcmp.ge.f32.partialorder %v344_v54, 0.0  ;;  %v607_v62 = vmul.f32 %v2944_v8, %v344_v54  ;;  %v2417_v63 = vpop.f32.mrb[8].mxu0  ;;  %vm580_vm15 = vcmp.ge.f32.partialorder %v454_v9, 0.0  ;;  %v2453_v17 = vpop.f32.mrb[8].mxu1  ;;  %v629_v20 = vmul.f32 %v2944_v8, %v454_v9 }
  0xfa   :  { %v359_v3 = vadd.f32 %v2417_v63, %v2942_v6  ;;  %2495 = vmatprep.mubr.bf16.mxu1 %v699_v59  ;;  %v353_v4 = vpop.f32.mrb[9].mxu0  ;;  %v656_v7 = vsel %vm559_vm11, %v349_v49, %v608_v58  ;;  %vm583_vm1 = vcmp.ge.f32.partialorder %v469_v10, 0.0  ;;  %v473_v21 = vpop.f32.mrb[9].mxu1  ;;  %v632_v25 = vmul.f32 %v2944_v8, %v469_v10 }
  0xfb   :  { %v354_v11 = vadd.f32 %v353_v4, %v2942_v6  ;;  %v655_v12 = vsel %vm558_vm12, %v344_v54, %v607_v62  ;;  %vm582_vm2 = vcmp.ge.f32.partialorder %v464_v13, 0.0  ;;  %v631_v28 = vmul.f32 %v2944_v8, %v464_v13 }
  0xfc   :  { %vm561_vm14 = vcmp.ge.f32.partialorder %v359_v3, 0.0  ;;  %v610_v15 = vmul.f32 %v2944_v8, %v359_v3  ;;  %v700_v16 = vpack.c.bf16 %v656_v7, %v655_v12  ;;  %v3003_v29 = vsel %vm580_vm15, %v454_v9, %v629_v20 }
  0xfd   :  { %vm560_vm0 = vcmp.ge.f32.partialorder %v354_v11, 0.0  ;;  %v609_v18 = vmul.f32 %v2944_v8, %v354_v11  ;;  %v2420_v19 = vpop.f32.mrb[10].mxu0  ;;  %v711_v32 = vpack.c.bf16 %v2993_v14, %v3003_v29  ;;  %v2456_v33 = vpop.f32.mrb[10].mxu1  ;;  %v3009_v36 = vsel %vm582_vm2, %v464_v13, %v631_v28 }
  0xfe   :  { %2496 = vmatmul.mubr.bf16.gmra.mrb[28].mxu1 %v700_v16  ;;  %v369_v22 = vadd.f32 %v2420_v19, %v2942_v6  ;;  %v363_v23 = vpop.f32.mrb[11].mxu0  ;;  %v658_v24 = vsel %vm561_vm14, %v359_v3, %v610_v15  ;;  %v3012_v38 = vsel %vm583_vm1, %v469_v10, %v632_v25  ;;  %v483_v39 = vpop.f32.mrb[11].mxu1  ;;  %v479_v44 = vadd.f32 %v2453_v17, %v2942_v6 }
  0xff   :  { %v364_v26 = vadd.f32 %v363_v23, %v2942_v6  ;;  %v657_v27 = vsel %vm560_vm0, %v354_v11, %v609_v18  ;;  %v712_v43 = vpack.c.bf16 %v3012_v38, %v3009_v36  ;;  %v474_v48 = vadd.f32 %v473_v21, %v2942_v6 }
 0x100   :  { %vm563_vm3 = vcmp.ge.f32.partialorder %v369_v22, 0.0  ;;  %v612_v30 = vmul.f32 %v2944_v8, %v369_v22  ;;  %v701_v31 = vpack.c.bf16 %v658_v24, %v657_v27  ;;  %v489_v49 = vadd.f32 %v2456_v33, %v2942_v6 }
 0x101   :  { %vm562_vm4 = vcmp.ge.f32.partialorder %v364_v26, 0.0  ;;  %v611_v34 = vmul.f32 %v2944_v8, %v364_v26  ;;  %v2423_v35 = vpop.f32.mrb[12].mxu0  ;;  %vm585_vm6 = vcmp.ge.f32.partialorder %v479_v44, 0.0  ;;  %v2459_v54 = vpop.f32.mrb[12].mxu1  ;;  %v634_v58 = vmul.f32 %v2944_v8, %v479_v44 }
 0x102   :  { %2499 = vmatprep.mubr.bf16.mxu1 %v701_v31  ;;  %v660_v40 = vsel %vm563_vm3, %v369_v22, %v612_v30  ;;  %v379_v41 = vadd.f32 %v2423_v35, %v2942_v6  ;;  %v373_v42 = vpop.f32.mrb[13].mxu0  ;;  %vm584_vm8 = vcmp.ge.f32.partialorder %v474_v48, 0.0  ;;  %v493_v59 = vpop.f32.mrb[13].mxu1  ;;  %v633_v0 = vmul.f32 %v2944_v8, %v474_v48 }
 0x103   :  { %v659_v45 = vsel %vm562_vm4, %v364_v26, %v611_v34  ;;  %v374_v46 = vadd.f32 %v373_v42, %v2942_v6  ;;  %vm587_vm9 = vcmp.ge.f32.partialorder %v489_v49, 0.0  ;;  %v636_v4 = vmul.f32 %v2944_v8, %v489_v49 }
 0x104   :  { %v702_v50 = vpack.c.bf16 %v660_v40, %v659_v45  ;;  %vm565_vm5 = vcmp.ge.f32.partialorder %v379_v41, 0.0  ;;  %v614_v51 = vmul.f32 %v2944_v8, %v379_v41  ;;  %v484_v7 = vadd.f32 %v483_v39, %v2942_v6 }
 0x105   :  { %vm564_vm7 = vcmp.ge.f32.partialorder %v374_v46, 0.0  ;;  %v613_v55 = vmul.f32 %v2944_v8, %v374_v46  ;;  %v2426_v57 = vpop.f32.mrb[14].mxu0  ;;  %v3030_v11 = vsel %vm584_vm8, %v474_v48, %v633_v0  ;;  %v2462_v12 = vpop.f32.mrb[14].mxu1  ;;  %v3036_v21 = vsel %vm585_vm6, %v479_v44, %v634_v58 }
 0x106   :  { %2500 = vmatmul.mubr.bf16.gmra.mrb[32].mxu1 %v702_v50  ;;  %v389_v61 = vadd.f32 %v2426_v57, %v2942_v6  ;;  %v383_v62 = vpop.f32.mrb[15].mxu0  ;;  %v662_v63 = vsel %vm565_vm5, %v379_v41, %v614_v51  ;;  %vm586_vm12 = vcmp.ge.f32.partialorder %v484_v7, 0.0  ;;  %v635_v16 = vmul.f32 %v2944_v8, %v484_v7  ;;  %v503_v17 = vpop.f32.mrb[15].mxu1 }
 0x107   :  { %v384_v2 = vadd.f32 %v383_v62, %v2942_v6  ;;  %v661_v3 = vsel %vm564_vm7, %v374_v46, %v613_v55  ;;  %v3039_v22 = vsel %vm587_vm9, %v489_v49, %v636_v4  ;;  %v713_v25 = vpack.c.bf16 %v3036_v21, %v3030_v11 }
 0x108   :  { %vm567_vm10 = vcmp.ge.f32.partialorder %v389_v61, 0.0  ;;  %v616_v9 = vmul.f32 %v2944_v8, %v389_v61  ;;  %v703_v10 = vpack.c.bf16 %v662_v63, %v661_v3  ;;  %v3044_v26 = vsel %vm586_vm12, %v484_v7, %v635_v16 }
 0x109   :  { %vm566_vm11 = vcmp.ge.f32.partialorder %v384_v2, 0.0  ;;  %v615_v13 = vmul.f32 %v2944_v8, %v384_v2  ;;  %v2429_v15 = vpop.f32.mrb[16].mxu0  ;;  %v714_v30 = vpack.c.bf16 %v3039_v22, %v3044_v26  ;;  %v2465_v31 = vpop.f32.mrb[16].mxu1  ;;  %v499_v35 = vadd.f32 %v2459_v54, %v2942_v6 }
 0x10a   :  { %2503 = vmatprep.mubr.bf16.mxu1 %v703_v10  ;;  %v664_v18 = vsel %vm567_vm10, %v389_v61, %v616_v9  ;;  %v399_v19 = vadd.f32 %v2429_v15, %v2942_v6  ;;  %v393_v20 = vpop.f32.mrb[17].mxu0  ;;  %v494_v39 = vadd.f32 %v493_v59, %v2942_v6  ;;  %v513_v40 = vpop.f32.mrb[17].mxu1  ;;  %v509_v45 = vadd.f32 %v2462_v12, %v2942_v6 }
 0x10b   :  { %v663_v23 = vsel %vm566_vm11, %v384_v2, %v615_v13  ;;  %v394_v24 = vadd.f32 %v393_v20, %v2942_v6  ;;  %v504_v46 = vadd.f32 %v503_v17, %v2942_v6  ;;  %vm589_vm15 = vcmp.ge.f32.partialorder %v499_v35, 0.0 }
 0x10c   :  { %v704_v27 = vpack.c.bf16 %v664_v18, %v663_v23  ;;  %vm569_vm13 = vcmp.ge.f32.partialorder %v399_v19, 0.0  ;;  %v618_v28 = vmul.f32 %v2944_v8, %v399_v19  ;;  %v638_v50 = vmul.f32 %v2944_v8, %v499_v35 }
 0x10d   :  { %vm568_vm14 = vcmp.ge.f32.partialorder %v394_v24, 0.0  ;;  %v617_v33 = vmul.f32 %v2944_v8, %v394_v24  ;;  %v2432_v34 = vpop.f32.mrb[18].mxu0  ;;  %vm588_vm1 = vcmp.ge.f32.partialorder %v494_v39, 0.0  ;;  %v2468_v55 = vpop.f32.mrb[18].mxu1  ;;  %v637_v59 = vmul.f32 %v2944_v8, %v494_v39 }
 0x10e   :  { %2504 = vmatmul.mubr.bf16.gmra.mrb[36].mxu1 %v704_v27  ;;  %v409_v41 = vadd.f32 %v2432_v34, %v2942_v6  ;;  %v403_v42 = vpop.f32.mrb[19].mxu0  ;;  %v666_v44 = vsel %vm569_vm13, %v399_v19, %v618_v28  ;;  %vm591_vm3 = vcmp.ge.f32.partialorder %v509_v45, 0.0  ;;  %v523_v61 = vpop.f32.mrb[19].mxu1  ;;  %v640_v2 = vmul.f32 %v2944_v8, %v509_v45 }
 0x10f   :  { %v404_v48 = vadd.f32 %v403_v42, %v2942_v6  ;;  %v665_v49 = vsel %vm568_vm14, %v394_v24, %v617_v33  ;;  %vm590_vm4 = vcmp.ge.f32.partialorder %v504_v46, 0.0  ;;  %v639_v7 = vmul.f32 %v2944_v8, %v504_v46 }
 0x110   :  { %vm571_vm0 = vcmp.ge.f32.partialorder %v409_v41, 0.0  ;;  %v620_v51 = vmul.f32 %v2944_v8, %v409_v41  ;;  %v705_v54 = vpack.c.bf16 %v666_v44, %v665_v49  ;;  %v3065_v9 = vsel %vm588_vm1, %v494_v39, %v637_v59 }
 0x111   :  { %vm570_vm2 = vcmp.ge.f32.partialorder %v404_v48, 0.0  ;;  %v619_v57 = vmul.f32 %v2944_v8, %v404_v48  ;;  %v2435_v58 = vpop.f32.mrb[20].mxu0  ;;  %v3069_v13 = vsel %vm589_vm15, %v499_v35, %v638_v50  ;;  %v2471_v15 = vpop.f32.mrb[20].mxu1  ;;  %v3074_v19 = vsel %vm590_vm4, %v504_v46, %v639_v7 }
 0x112   :  { %2507 = vmatprep.mubr.bf16.mxu1 %v705_v54  ;;  %v668_v62 = vsel %vm571_vm0, %v409_v41, %v620_v51  ;;  %v419_v63 = vadd.f32 %v2435_v58, %v2942_v6  ;;  %v413_v0 = vpop.f32.mrb[21].mxu0  ;;  %v715_v18 = vpack.c.bf16 %v3069_v13, %v3065_v9  ;;  %v533_v20 = vpop.f32.mrb[21].mxu1  ;;  %v688_v28 = vsel %vm591_vm3, %v509_v45, %v640_v2 }
 0x113   :  { %v667_v3 = vsel %vm570_vm2, %v404_v48, %v619_v57  ;;  %v414_v4 = vadd.f32 %v413_v0, %v2942_v6  ;;  %v519_v33 = vadd.f32 %v2465_v31, %v2942_v6  ;;  %v716_v39 = vpack.c.bf16 %v688_v28, %v3074_v19 }
 0x114   :  { %v706_v10 = vpack.c.bf16 %v668_v62, %v667_v3  ;;  %vm573_vm5 = vcmp.ge.f32.partialorder %v419_v63, 0.0  ;;  %v622_v12 = vmul.f32 %v2944_v8, %v419_v63  ;;  %v514_v41 = vadd.f32 %v513_v40, %v2942_v6 }
 0x115   :  { %vm572_vm6 = vcmp.ge.f32.partialorder %v414_v4, 0.0  ;;  %v621_v16 = vmul.f32 %v2944_v8, %v414_v4  ;;  %v2438_v17 = vpop.f32.mrb[22].mxu0  ;;  %vm593_vm8 = vcmp.ge.f32.partialorder %v519_v33, 0.0  ;;  %v2474_v46 = vpop.f32.mrb[22].mxu1  ;;  %v642_v45 = vmul.f32 %v2944_v8, %v519_v33 }
 0x116   :  { %2508 = vmatmul.mubr.bf16.gmra.mrb[40].mxu1 %v706_v10  ;;  %v429_v23 = vadd.f32 %v2438_v17, %v2942_v6  ;;  %v423_v24 = vpop.f32.mrb[23].mxu0  ;;  %v670_v27 = vsel %vm573_vm5, %v419_v63, %v622_v12  ;;  %vm592_vm10 = vcmp.ge.f32.partialorder %v514_v41, 0.0  ;;  %v543_v31 = vpop.f32.mrb[23].mxu1  ;;  %v641_v50 = vmul.f32 %v2944_v8, %v514_v41 }
 0x117   :  { %v424_v34 = vadd.f32 %v423_v24, %v2942_v6  ;;  %v669_v35 = vsel %vm572_vm6, %v414_v4, %v621_v16  ;;  %v529_v51 = vadd.f32 %v2468_v55, %v2942_v6  ;;  %v524_v40 = vadd.f32 %v523_v61, %v2942_v6 }
 0x118   :  { %vm575_vm7 = vcmp.ge.f32.partialorder %v429_v23, 0.0  ;;  %v624_v42 = vmul.f32 %v2944_v8, %v429_v23  ;;  %v707_v44 = vpack.c.bf16 %v670_v27, %v669_v35  ;;  %v690_v57 = vsel %vm593_vm8, %v519_v33, %v642_v45 }
 0x119   :  { %vm574_vm9 = vcmp.ge.f32.partialorder %v424_v34, 0.0  ;;  %v623_v48 = vmul.f32 %v2944_v8, %v424_v34  ;;  %v539_v58 = vadd.f32 %v2471_v15, %v2942_v6  ;;  %v534_v59 = vadd.f32 %v533_v20, %v2942_v6 }
 0x11a   :  { %2511 = vmatprep.mubr.bf16.mxu1 %v707_v44  ;;  %v672_v49 = vsel %vm575_vm7, %v429_v23, %v624_v42  ;;  %vm595_vm11 = vcmp.ge.f32.partialorder %v529_v51, 0.0  ;;  %v644_v63 = vmul.f32 %v2944_v8, %v529_v51  ;;  %vm594_vm12 = vcmp.ge.f32.partialorder %v524_v40, 0.0 }
 0x11b   :  { %v671_v54 = vsel %vm574_vm9, %v424_v34, %v623_v48  ;;  %v643_v0 = vmul.f32 %v2944_v8, %v524_v40  ;;  %v689_v2 = vsel %vm592_vm10, %v514_v41, %v641_v50  ;;  %vm597_vm13 = vcmp.ge.f32.partialorder %v539_v58, 0.0 }
 0x11c   :  { %v708_v62 = vpack.c.bf16 %v672_v49, %v671_v54  ;;  %v646_v55 = vmul.f32 %v2944_v8, %v539_v58  ;;  %v717_v61 = vpack.c.bf16 %v690_v57, %v689_v2  ;;  %v692_v3 = vsel %vm595_vm11, %v529_v51, %v644_v63 }
 0x11d   :  { %vm596_vm14 = vcmp.ge.f32.partialorder %v534_v59, 0.0  ;;  %v645_v4 = vmul.f32 %v2944_v8, %v534_v59  ;;  %v691_v7 = vsel %vm594_vm12, %v524_v40, %v643_v0  ;;  %v549_v10 = vadd.f32 %v2474_v46, %v2942_v6 }
 0x11e   :  { %2512 = vmatmul.mubr.bf16.gmra.mrb[44].mxu1 %v708_v62  ;;  %v544_v12 = vadd.f32 %v543_v31, %v2942_v6  ;;  %v694_v15 = vsel %vm597_vm13, %v539_v58, %v646_v55  ;;  %v718_v16 = vpack.c.bf16 %v692_v3, %v691_v7  ;;  %v2625_v6 = vld [vmem:[%s4158_s4 + $0x38] sm:$0xff]   ;;  %s2217_s4 = sld [smem:[#allocation2 + $0x2]] }
 0x11f   :  { %2515 = vmatprep.mubr.bf16.mxu1 %v709_v52  ;;  %v693_v17 = vsel %vm596_vm14, %v534_v59, %v645_v4  ;;  %vm599_vm15 = vcmp.ge.f32.partialorder %v549_v10, 0.0  ;;  %v648_v19 = vmul.f32 %v2944_v8, %v549_v10  ;;  %2553 = vmatprep.subr.bf16.mxu0 %v2625_v6  ;;  %v3127_v52 = vstv %s2216_s20 }
 0x120   :  { %vm598_vm0 = vcmp.ge.f32.partialorder %v544_v12, 0.0  ;;  %v647_v20 = vmul.f32 %v2944_v8, %v544_v12  ;;  %v719_v23 = vpack.c.bf16 %v694_v15, %v693_v17  ;;  %2554 = vmatpush3.bf16.msra.mxu0 %v2625_v6  ;;  %v739_v8 = vsub.s32 1, %v2927_v1 }
 0x121   :  { %v696_v27 = vsel %vm599_vm15, %v549_v10, %v648_v19 }
 0x122   :  { %v695_v24 = vsel %vm598_vm0, %v544_v12, %v647_v20  ;;  %v3125_v37 = vrot.slane %v2939_v5, %v739_v8 }
 0x123   :  { %v720_v28 = vpack.c.bf16 %v696_v27, %v695_v24 }
 0x126   :  { %2516 = vmatmul.mubr.bf16.gmra.mrb[48].mxu1 %v710_v60 }
 0x127   :  { %2519 = vmatprep.mubr.bf16.mxu1 %v711_v32 }
 0x12e   :  { %2520 = vmatmul.mubr.bf16.gmra.mrb[52].mxu1 %v712_v43 }
 0x12f   :  { %2523 = vmatprep.mubr.bf16.mxu1 %v713_v25 }
 0x136   :  { %2524 = vmatmul.mubr.bf16.gmra.mrb[56].mxu1 %v714_v30 }
 0x137   :  { %2527 = vmatprep.mubr.bf16.mxu1 %v715_v18 }
 0x13e   :  { %2528 = vmatmul.mubr.bf16.gmra.mrb[60].mxu1 %v716_v39 }
 0x13f   :  { %2531 = vmatprep.mubr.bf16.mxu1 %v717_v61 }
 0x146   :  { %2532 = vmatmul.mubr.bf16.gmra.mrb[64].mxu1 %v718_v16 }
 0x147   :  { %2535 = vmatprep.mubr.bf16.mxu1 %v719_v23 }
 0x14e   :  { %2536 = vmatmul.mubr.bf16.gmra.mrb[68].mxu1 %v720_v28 }
 0x1c9   :  { %v2493_v47 = vpop.f32.mrb[24].mxu1 }
 0x1ca   :  { %v832_v53 = vadd.f32 %v2493_v47, %v3125_v37  ;;  %v823_v56 = vpop.f32.mrb[25].mxu1 }
 0x1cb   :  { %v824_v60 = vadd.f32 %v823_v56, %v3125_v37  ;;  %v2494_v14 = vpop.f32.mrb[26].mxu1 }
 0x1cc   :  { %v1065_v29 = vmul.f32 %v3127_v52, %v832_v53  ;;  %v835_v32 = vadd.f32 %v2494_v14, %v3125_v37  ;;  %v826_v36 = vpop.f32.mrb[27].mxu1  ;;  %vm1016_vm1 = vcmp.ge.f32.partialorder %v832_v53, 0.0 }
 0x1cd   :  { %v1063_v1 = vmul.f32 %v3127_v52, %v824_v60  ;;  %v827_v5 = vadd.f32 %v826_v36, %v3125_v37  ;;  %vm1014_vm2 = vcmp.ge.f32.partialorder %v824_v60, 0.0 }
 0x1ce   :  { %vm1017_vm3 = vcmp.ge.f32.partialorder %v835_v32, 0.0  ;;  %v1066_v38 = vmul.f32 %v3127_v52, %v835_v32  ;;  %v1113_v11 = vsel %vm1016_vm1, %v832_v53, %v1065_v29 }
 0x1cf   :  { %vm1015_vm4 = vcmp.ge.f32.partialorder %v827_v5, 0.0  ;;  %v1064_v43 = vmul.f32 %v3127_v52, %v827_v5  ;;  %v1111_v26 = vsel %vm1014_vm2, %v824_v60, %v1063_v1 }
 0x1d0   :  { %v1114_v21 = vsel %vm1017_vm3, %v835_v32, %v1066_v38 }
 0x1d1   :  { %v1160_v22 = vpack.c.bf16 %v1114_v21, %v1113_v11  ;;  %v2497_v25 = vpop.f32.mrb[28].mxu1  ;;  %v1112_v30 = vsel %vm1015_vm4, %v827_v5, %v1064_v43 }
 0x1d2   :  { %v848_v9 = vadd.f32 %v2497_v25, %v3125_v37  ;;  %v839_v13 = vpop.f32.mrb[29].mxu1  ;;  %v1159_v18 = vpack.c.bf16 %v1112_v30, %v1111_v26 }
 0x1d3   :  { %v840_v33 = vadd.f32 %v839_v13, %v3125_v37  ;;  %v2498_v34 = vpop.f32.mrb[30].mxu1 }
 0x1d4   :  { %vm1020_vm5 = vcmp.ge.f32.partialorder %v848_v9, 0.0  ;;  %v1069_v35 = vmul.f32 %v3127_v52, %v848_v9  ;;  %v851_v39 = vadd.f32 %v2498_v34, %v3125_v37  ;;  %v842_v41 = vpop.f32.mrb[31].mxu1  ;;  %2555 = vmatprep.mubr.bf16.mxu0 %v1159_v18 }
 0x1d5   :  { %vm1018_vm6 = vcmp.ge.f32.partialorder %v840_v33, 0.0  ;;  %v1067_v42 = vmul.f32 %v3127_v52, %v840_v33  ;;  %v843_v44 = vadd.f32 %v842_v41, %v3125_v37  ;;  %2556 = vmatmul.mubr.bf16.vlgmr.msra.gmra.mrb[24].mxu0 %v1160_v22 }
 0x1d6   :  { %vm1021_vm7 = vcmp.ge.f32.partialorder %v851_v39, 0.0  ;;  %v1070_v46 = vmul.f32 %v3127_v52, %v851_v39  ;;  %v1117_v48 = vsel %vm1020_vm5, %v848_v9, %v1069_v35 }
 0x1d7   :  { %vm1019_vm8 = vcmp.ge.f32.partialorder %v843_v44, 0.0  ;;  %v1068_v45 = vmul.f32 %v3127_v52, %v843_v44  ;;  %v1115_v31 = vsel %vm1018_vm6, %v840_v33, %v1067_v42 }
 0x1d8   :  { %v1118_v49 = vsel %vm1021_vm7, %v851_v39, %v1070_v46 }
 0x1d9   :  { %v2501_v50 = vpop.f32.mrb[32].mxu1  ;;  %v1116_v51 = vsel %vm1019_vm8, %v843_v44, %v1068_v45  ;;  %v1162_v40 = vpack.c.bf16 %v1118_v49, %v1117_v48 }
 0x1da   :  { %v864_v54 = vadd.f32 %v2501_v50, %v3125_v37  ;;  %v855_v57 = vpop.f32.mrb[33].mxu1  ;;  %v1161_v58 = vpack.c.bf16 %v1116_v51, %v1115_v31 }
 0x1db   :  { %v856_v59 = vadd.f32 %v855_v57, %v3125_v37  ;;  %v2502_v62 = vpop.f32.mrb[34].mxu1 }
 0x1dc   :  { %vm1024_vm9 = vcmp.ge.f32.partialorder %v864_v54, 0.0  ;;  %v1073_v63 = vmul.f32 %v3127_v52, %v864_v54  ;;  %2559 = vmatprep.mubr.bf16.mxu0 %v1161_v58  ;;  %v867_v0 = vadd.f32 %v2502_v62, %v3125_v37  ;;  %v858_v2 = vpop.f32.mrb[35].mxu1 }
 0x1dd   :  { %vm1022_vm10 = vcmp.ge.f32.partialorder %v856_v59, 0.0  ;;  %v1071_v55 = vmul.f32 %v3127_v52, %v856_v59  ;;  %2560 = vmatmul.mubr.bf16.gmra.mrb[28].mxu0 %v1162_v40  ;;  %v859_v61 = vadd.f32 %v858_v2, %v3125_v37 }
 0x1de   :  { %vm1025_vm11 = vcmp.ge.f32.partialorder %v867_v0, 0.0  ;;  %v1074_v3 = vmul.f32 %v3127_v52, %v867_v0  ;;  %v1121_v4 = vsel %vm1024_vm9, %v864_v54, %v1073_v63 }
 0x1df   :  { %vm1023_vm12 = vcmp.ge.f32.partialorder %v859_v61, 0.0  ;;  %v1072_v7 = vmul.f32 %v3127_v52, %v859_v61  ;;  %v1119_v10 = vsel %vm1022_vm10, %v856_v59, %v1071_v55 }
 0x1e0   :  { %v1122_v12 = vsel %vm1025_vm11, %v867_v0, %v1074_v3 }
 0x1e1   :  { %v1120_v15 = vsel %vm1023_vm12, %v859_v61, %v1072_v7  ;;  %v1164_v16 = vpack.c.bf16 %v1122_v12, %v1121_v4  ;;  %v2505_v17 = vpop.f32.mrb[36].mxu1 }
 0x1e2   :  { %v1163_v19 = vpack.c.bf16 %v1120_v15, %v1119_v10  ;;  %v880_v20 = vadd.f32 %v2505_v17, %v3125_v37  ;;  %v871_v23 = vpop.f32.mrb[37].mxu1 }
 0x1e3   :  { %v872_v24 = vadd.f32 %v871_v23, %v3125_v37  ;;  %v2506_v27 = vpop.f32.mrb[38].mxu1 }
 0x1e4   :  { %2563 = vmatprep.mubr.bf16.mxu0 %v1163_v19  ;;  %vm1028_vm13 = vcmp.ge.f32.partialorder %v880_v20, 0.0  ;;  %v1077_v28 = vmul.f32 %v3127_v52, %v880_v20  ;;  %v883_v6 = vadd.f32 %v2506_v27, %v3125_v37  ;;  %v874_v8 = vpop.f32.mrb[39].mxu1 }
 0x1e5   :  { %2564 = vmatmul.mubr.bf16.gmra.mrb[32].mxu0 %v1164_v16  ;;  %vm1026_vm14 = vcmp.ge.f32.partialorder %v872_v24, 0.0  ;;  %v1075_v47 = vmul.f32 %v3127_v52, %v872_v24  ;;  %v875_v53 = vadd.f32 %v874_v8, %v3125_v37 }
 0x1e6   :  { %vm1029_vm15 = vcmp.ge.f32.partialorder %v883_v6, 0.0  ;;  %v1078_v56 = vmul.f32 %v3127_v52, %v883_v6  ;;  %v1125_v60 = vsel %vm1028_vm13, %v880_v20, %v1077_v28 }
 0x1e7   :  { %vm1027_vm0 = vcmp.ge.f32.partialorder %v875_v53, 0.0  ;;  %v1076_v14 = vmul.f32 %v3127_v52, %v875_v53  ;;  %v1123_v29 = vsel %vm1026_vm14, %v872_v24, %v1075_v47 }
 0x1e8   :  { %v1126_v32 = vsel %vm1029_vm15, %v883_v6, %v1078_v56 }
 0x1e9   :  { %v1124_v36 = vsel %vm1027_vm0, %v875_v53, %v1076_v14  ;;  %v1166_v1 = vpack.c.bf16 %v1126_v32, %v1125_v60  ;;  %v2509_v5 = vpop.f32.mrb[40].mxu1 }
 0x1ea   :  { %v1165_v38 = vpack.c.bf16 %v1124_v36, %v1123_v29  ;;  %v896_v43 = vadd.f32 %v2509_v5, %v3125_v37  ;;  %v887_v11 = vpop.f32.mrb[41].mxu1 }
 0x1eb   :  { %v888_v21 = vadd.f32 %v887_v11, %v3125_v37  ;;  %v2510_v22 = vpop.f32.mrb[42].mxu1 }
 0x1ec   :  { %2567 = vmatprep.mubr.bf16.mxu0 %v1165_v38  ;;  %vm1032_vm1 = vcmp.ge.f32.partialorder %v896_v43, 0.0  ;;  %v1081_v25 = vmul.f32 %v3127_v52, %v896_v43  ;;  %v899_v26 = vadd.f32 %v2510_v22, %v3125_v37  ;;  %v890_v30 = vpop.f32.mrb[43].mxu1 }
 0x1ed   :  { %2568 = vmatmul.mubr.bf16.gmra.mrb[36].mxu0 %v1166_v1  ;;  %vm1030_vm2 = vcmp.ge.f32.partialorder %v888_v21, 0.0  ;;  %v1079_v9 = vmul.f32 %v3127_v52, %v888_v21  ;;  %v891_v13 = vadd.f32 %v890_v30, %v3125_v37 }
 0x1ee   :  { %vm1033_vm3 = vcmp.ge.f32.partialorder %v899_v26, 0.0  ;;  %v1082_v18 = vmul.f32 %v3127_v52, %v899_v26  ;;  %v1129_v33 = vsel %vm1032_vm1, %v896_v43, %v1081_v25 }
 0x1ef   :  { %vm1031_vm4 = vcmp.ge.f32.partialorder %v891_v13, 0.0  ;;  %v1080_v34 = vmul.f32 %v3127_v52, %v891_v13  ;;  %v1127_v35 = vsel %vm1030_vm2, %v888_v21, %v1079_v9 }
 0x1f0   :  { %v1130_v39 = vsel %vm1033_vm3, %v899_v26, %v1082_v18 }
 0x1f1   :  { %v1128_v41 = vsel %vm1031_vm4, %v891_v13, %v1080_v34  ;;  %v1168_v42 = vpack.c.bf16 %v1130_v39, %v1129_v33  ;;  %v2513_v44 = vpop.f32.mrb[44].mxu1 }
 0x1f2   :  { %v1167_v46 = vpack.c.bf16 %v1128_v41, %v1127_v35  ;;  %v912_v48 = vadd.f32 %v2513_v44, %v3125_v37  ;;  %v903_v45 = vpop.f32.mrb[45].mxu1 }
 0x1f3   :  { %v904_v31 = vadd.f32 %v903_v45, %v3125_v37  ;;  %v2514_v49 = vpop.f32.mrb[46].mxu1 }
 0x1f4   :  { %2571 = vmatprep.mubr.bf16.mxu0 %v1167_v46  ;;  %vm1036_vm5 = vcmp.ge.f32.partialorder %v912_v48, 0.0  ;;  %v1085_v50 = vmul.f32 %v3127_v52, %v912_v48  ;;  %v915_v51 = vadd.f32 %v2514_v49, %v3125_v37  ;;  %v906_v40 = vpop.f32.mrb[47].mxu1 }
 0x1f5   :  { %2572 = vmatmul.mubr.bf16.gmra.mrb[40].mxu0 %v1168_v42  ;;  %vm1034_vm6 = vcmp.ge.f32.partialorder %v904_v31, 0.0  ;;  %v1083_v54 = vmul.f32 %v3127_v52, %v904_v31  ;;  %v907_v57 = vadd.f32 %v906_v40, %v3125_v37 }
 0x1f6   :  { %vm1037_vm7 = vcmp.ge.f32.partialorder %v915_v51, 0.0  ;;  %v1086_v58 = vmul.f32 %v3127_v52, %v915_v51  ;;  %v1133_v59 = vsel %vm1036_vm5, %v912_v48, %v1085_v50 }
 0x1f7   :  { %vm1035_vm8 = vcmp.ge.f32.partialorder %v907_v57, 0.0  ;;  %v1084_v62 = vmul.f32 %v3127_v52, %v907_v57  ;;  %v1131_v63 = vsel %vm1034_vm6, %v904_v31, %v1083_v54 }
 0x1f8   :  { %v1134_v0 = vsel %vm1037_vm7, %v915_v51, %v1086_v58 }
 0x1f9   :  { %v1132_v2 = vsel %vm1035_vm8, %v907_v57, %v1084_v62  ;;  %v1170_v55 = vpack.c.bf16 %v1134_v0, %v1133_v59  ;;  %v2517_v61 = vpop.f32.mrb[48].mxu1 }
 0x1fa   :  { %v1169_v3 = vpack.c.bf16 %v1132_v2, %v1131_v63  ;;  %v928_v4 = vadd.f32 %v2517_v61, %v3125_v37  ;;  %v919_v7 = vpop.f32.mrb[49].mxu1 }
 0x1fb   :  { %v920_v10 = vadd.f32 %v919_v7, %v3125_v37  ;;  %v2518_v12 = vpop.f32.mrb[50].mxu1 }
 0x1fc   :  { %2575 = vmatprep.mubr.bf16.mxu0 %v1169_v3  ;;  %vm1040_vm9 = vcmp.ge.f32.partialorder %v928_v4, 0.0  ;;  %v1089_v15 = vmul.f32 %v3127_v52, %v928_v4  ;;  %v931_v16 = vadd.f32 %v2518_v12, %v3125_v37  ;;  %v922_v17 = vpop.f32.mrb[51].mxu1 }
 0x1fd   :  { %2576 = vmatmul.mubr.bf16.gmra.mrb[44].mxu0 %v1170_v55  ;;  %vm1038_vm10 = vcmp.ge.f32.partialorder %v920_v10, 0.0  ;;  %v1087_v19 = vmul.f32 %v3127_v52, %v920_v10  ;;  %v923_v20 = vadd.f32 %v922_v17, %v3125_v37 }
 0x1fe   :  { %vm1041_vm11 = vcmp.ge.f32.partialorder %v931_v16, 0.0  ;;  %v1090_v23 = vmul.f32 %v3127_v52, %v931_v16  ;;  %v1137_v24 = vsel %vm1040_vm9, %v928_v4, %v1089_v15 }
 0x1ff   :  { %vm1039_vm12 = vcmp.ge.f32.partialorder %v923_v20, 0.0  ;;  %v1088_v27 = vmul.f32 %v3127_v52, %v923_v20  ;;  %v1135_v28 = vsel %vm1038_vm10, %v920_v10, %v1087_v19 }
 0x200   :  { %v1138_v6 = vsel %vm1041_vm11, %v931_v16, %v1090_v23 }
 0x201   :  { %v1136_v8 = vsel %vm1039_vm12, %v923_v20, %v1088_v27  ;;  %v1172_v47 = vpack.c.bf16 %v1138_v6, %v1137_v24  ;;  %v2521_v53 = vpop.f32.mrb[52].mxu1 }
 0x202   :  { %v1171_v56 = vpack.c.bf16 %v1136_v8, %v1135_v28  ;;  %v944_v60 = vadd.f32 %v2521_v53, %v3125_v37  ;;  %v935_v14 = vpop.f32.mrb[53].mxu1 }
 0x203   :  { %v936_v29 = vadd.f32 %v935_v14, %v3125_v37  ;;  %v2522_v32 = vpop.f32.mrb[54].mxu1 }
 0x204   :  { %2579 = vmatprep.mubr.bf16.mxu0 %v1171_v56  ;;  %vm1044_vm13 = vcmp.ge.f32.partialorder %v944_v60, 0.0  ;;  %v1093_v36 = vmul.f32 %v3127_v52, %v944_v60  ;;  %v947_v1 = vadd.f32 %v2522_v32, %v3125_v37  ;;  %v938_v5 = vpop.f32.mrb[55].mxu1 }
 0x205   :  { %2580 = vmatmul.mubr.bf16.gmra.mrb[48].mxu0 %v1172_v47  ;;  %vm1042_vm14 = vcmp.ge.f32.partialorder %v936_v29, 0.0  ;;  %v1091_v38 = vmul.f32 %v3127_v52, %v936_v29  ;;  %v939_v43 = vadd.f32 %v938_v5, %v3125_v37 }
 0x206   :  { %vm1045_vm15 = vcmp.ge.f32.partialorder %v947_v1, 0.0  ;;  %v1094_v11 = vmul.f32 %v3127_v52, %v947_v1  ;;  %v1141_v21 = vsel %vm1044_vm13, %v944_v60, %v1093_v36 }
 0x207   :  { %vm1043_vm0 = vcmp.ge.f32.partialorder %v939_v43, 0.0  ;;  %v1092_v22 = vmul.f32 %v3127_v52, %v939_v43  ;;  %v1139_v25 = vsel %vm1042_vm14, %v936_v29, %v1091_v38 }
 0x208   :  { %v1142_v26 = vsel %vm1045_vm15, %v947_v1, %v1094_v11 }
 0x209   :  { %v1140_v30 = vsel %vm1043_vm0, %v939_v43, %v1092_v22  ;;  %v1174_v9 = vpack.c.bf16 %v1142_v26, %v1141_v21  ;;  %v2525_v13 = vpop.f32.mrb[56].mxu1 }
 0x20a   :  { %v1173_v18 = vpack.c.bf16 %v1140_v30, %v1139_v25  ;;  %v960_v33 = vadd.f32 %v2525_v13, %v3125_v37  ;;  %v951_v34 = vpop.f32.mrb[57].mxu1 }
 0x20b   :  { %v952_v35 = vadd.f32 %v951_v34, %v3125_v37  ;;  %v2526_v39 = vpop.f32.mrb[58].mxu1 }
 0x20c   :  { %2583 = vmatprep.mubr.bf16.mxu0 %v1173_v18  ;;  %vm1048_vm1 = vcmp.ge.f32.partialorder %v960_v33, 0.0  ;;  %v1097_v41 = vmul.f32 %v3127_v52, %v960_v33  ;;  %v963_v42 = vadd.f32 %v2526_v39, %v3125_v37  ;;  %v954_v44 = vpop.f32.mrb[59].mxu1 }
 0x20d   :  { %2584 = vmatmul.mubr.bf16.gmra.mrb[52].mxu0 %v1174_v9  ;;  %vm1046_vm2 = vcmp.ge.f32.partialorder %v952_v35, 0.0  ;;  %v1095_v46 = vmul.f32 %v3127_v52, %v952_v35  ;;  %v955_v48 = vadd.f32 %v954_v44, %v3125_v37 }
 0x20e   :  { %vm1049_vm3 = vcmp.ge.f32.partialorder %v963_v42, 0.0  ;;  %v1098_v45 = vmul.f32 %v3127_v52, %v963_v42  ;;  %v1145_v31 = vsel %vm1048_vm1, %v960_v33, %v1097_v41  ;;  %vm1873_vm1 = vcmask 31744  }
 0x20f   :  { %vm1047_vm4 = vcmp.ge.f32.partialorder %v955_v48, 0.0  ;;  %v1096_v49 = vmul.f32 %v3127_v52, %v955_v48  ;;  %v1143_v50 = vsel %vm1046_vm2, %v952_v35, %v1095_v46 }
 0x210   :  { %v1146_v51 = vsel %vm1049_vm3, %v963_v42, %v1098_v45  ;;  %v3228_v45 = vld [vmem:[%s4161_s7] ss:$0 sm:$0xff] }
 0x211   :  { %v1144_v40 = vsel %vm1047_vm4, %v955_v48, %v1096_v49  ;;  %v1176_v54 = vpack.c.bf16 %v1146_v51, %v1145_v31  ;;  %v2529_v57 = vpop.f32.mrb[60].mxu1  ;;  %v3230_v31 = vstv %s2217_s4 }
 0x212   :  { %v1175_v58 = vpack.c.bf16 %v1144_v40, %v1143_v50  ;;  %v976_v59 = vadd.f32 %v2529_v57, %v3125_v37  ;;  %v967_v62 = vpop.f32.mrb[61].mxu1 }
 0x213   :  { %v968_v63 = vadd.f32 %v967_v62, %v3125_v37  ;;  %v2530_v0 = vpop.f32.mrb[62].mxu1 }
 0x214   :  { %2587 = vmatprep.mubr.bf16.mxu0 %v1175_v58  ;;  %vm1052_vm5 = vcmp.ge.f32.partialorder %v976_v59, 0.0  ;;  %v1101_v2 = vmul.f32 %v3127_v52, %v976_v59  ;;  %v979_v55 = vadd.f32 %v2530_v0, %v3125_v37  ;;  %v970_v61 = vpop.f32.mrb[63].mxu1 }
 0x215   :  { %2588 = vmatmul.mubr.bf16.gmra.mrb[56].mxu0 %v1176_v54  ;;  %vm1050_vm6 = vcmp.ge.f32.partialorder %v968_v63, 0.0  ;;  %v1099_v3 = vmul.f32 %v3127_v52, %v968_v63  ;;  %v971_v4 = vadd.f32 %v970_v61, %v3125_v37 }
 0x216   :  { %vm1053_vm7 = vcmp.ge.f32.partialorder %v979_v55, 0.0  ;;  %v1102_v7 = vmul.f32 %v3127_v52, %v979_v55  ;;  %v1149_v10 = vsel %vm1052_vm5, %v976_v59, %v1101_v2 }
 0x217   :  { %vm1051_vm8 = vcmp.ge.f32.partialorder %v971_v4, 0.0  ;;  %v1100_v12 = vmul.f32 %v3127_v52, %v971_v4  ;;  %v1147_v15 = vsel %vm1050_vm6, %v968_v63, %v1099_v3  ;;  %v3255_v63 = vld [vmem:[%s4159_s5] ss:$0 sm:$0xff]  ;;  %vm1679_vm6 = vcmask 293888  }
 0x218   :  { %v1150_v16 = vsel %vm1053_vm7, %v979_v55, %v1102_v7 }
 0x219   :  { %v1148_v17 = vsel %vm1051_vm8, %v971_v4, %v1100_v12  ;;  %v1178_v19 = vpack.c.bf16 %v1150_v16, %v1149_v10  ;;  %v2533_v20 = vpop.f32.mrb[64].mxu1 }
 0x21a   :  { %v1177_v23 = vpack.c.bf16 %v1148_v17, %v1147_v15  ;;  %v992_v24 = vadd.f32 %v2533_v20, %v3125_v37  ;;  %v983_v27 = vpop.f32.mrb[65].mxu1 }
 0x21b   :  { %v984_v28 = vadd.f32 %v983_v27, %v3125_v37  ;;  %v2534_v6 = vpop.f32.mrb[66].mxu1 }
 0x21c   :  { %2591 = vmatprep.mubr.bf16.mxu0 %v1177_v23  ;;  %vm1056_vm9 = vcmp.ge.f32.partialorder %v992_v24, 0.0  ;;  %v1105_v8 = vmul.f32 %v3127_v52, %v992_v24  ;;  %v995_v47 = vadd.f32 %v2534_v6, %v3125_v37  ;;  %v986_v53 = vpop.f32.mrb[67].mxu1 }
 0x21d   :  { %2592 = vmatmul.mubr.bf16.gmra.mrb[60].mxu0 %v1178_v19  ;;  %vm1054_vm10 = vcmp.ge.f32.partialorder %v984_v28, 0.0  ;;  %v1103_v56 = vmul.f32 %v3127_v52, %v984_v28  ;;  %v987_v60 = vadd.f32 %v986_v53, %v3125_v37 }
 0x21e   :  { %vm1057_vm11 = vcmp.ge.f32.partialorder %v995_v47, 0.0  ;;  %v1106_v14 = vmul.f32 %v3127_v52, %v995_v47  ;;  %v1153_v29 = vsel %vm1056_vm9, %v992_v24, %v1105_v8 }
 0x21f   :  { %vm1055_vm12 = vcmp.ge.f32.partialorder %v987_v60, 0.0  ;;  %v1104_v32 = vmul.f32 %v3127_v52, %v987_v60  ;;  %v1151_v36 = vsel %vm1054_vm10, %v984_v28, %v1103_v56 }
 0x220   :  { %v1154_v1 = vsel %vm1057_vm11, %v995_v47, %v1106_v14 }
 0x221   :  { %v1152_v5 = vsel %vm1055_vm12, %v987_v60, %v1104_v32  ;;  %v1180_v38 = vpack.c.bf16 %v1154_v1, %v1153_v29  ;;  %v2537_v43 = vpop.f32.mrb[68].mxu1 }
 0x222   :  { %v1179_v11 = vpack.c.bf16 %v1152_v5, %v1151_v36  ;;  %v1008_v21 = vadd.f32 %v2537_v43, %v3125_v37  ;;  %v999_v22 = vpop.f32.mrb[69].mxu1 }
 0x223   :  { %v1000_v25 = vadd.f32 %v999_v22, %v3125_v37  ;;  %v2538_v26 = vpop.f32.mrb[70].mxu1 }
 0x224   :  { %2595 = vmatprep.mubr.bf16.mxu0 %v1179_v11  ;;  %vm1060_vm13 = vcmp.ge.f32.partialorder %v1008_v21, 0.0  ;;  %v1109_v30 = vmul.f32 %v3127_v52, %v1008_v21  ;;  %v1011_v9 = vadd.f32 %v2538_v26, %v3125_v37  ;;  %v1002_v13 = vpop.f32.mrb[71].mxu1 }
 0x225   :  { %2596 = vmatmul.mubr.bf16.gmra.mrb[64].mxu0 %v1180_v38  ;;  %vm1058_vm14 = vcmp.ge.f32.partialorder %v1000_v25, 0.0  ;;  %v1107_v18 = vmul.f32 %v3127_v52, %v1000_v25  ;;  %v1003_v33 = vadd.f32 %v1002_v13, %v3125_v37 }
 0x226   :  { %vm1061_vm15 = vcmp.ge.f32.partialorder %v1011_v9, 0.0  ;;  %v1110_v34 = vmul.f32 %v3127_v52, %v1011_v9  ;;  %v1157_v35 = vsel %vm1060_vm13, %v1008_v21, %v1109_v30 }
 0x227   :  { %vm1059_vm0 = vcmp.ge.f32.partialorder %v1003_v33, 0.0  ;;  %v1108_v39 = vmul.f32 %v3127_v52, %v1003_v33  ;;  %v1155_v41 = vsel %vm1058_vm14, %v1000_v25, %v1107_v18 }
 0x228   :  { %v1158_v42 = vsel %vm1061_vm15, %v1011_v9, %v1110_v34 }
 0x229   :  { %v1156_v44 = vsel %vm1059_vm0, %v1003_v33, %v1108_v39  ;;  %v1182_v46 = vpack.c.bf16 %v1158_v42, %v1157_v35 }
 0x22a   :  { %v1181_v48 = vpack.c.bf16 %v1156_v44, %v1155_v41 }
 0x22c   :  { %2599 = vmatprep.mubr.bf16.mxu0 %v1181_v48 }
 0x22d   :  { %2600 = vmatmul.mubr.bf16.gmra.mrb[68].mxu0 %v1182_v46 }
 0x2a8   :  { %v2557_v37 = vpop.f32.mrb[24].mxu0 }
 0x2a9   :  { %v3233_v49 = vadd.f32 %v2557_v37, %v3228_v45  ;;  %v1288_v52 = vpop.f32.mrb[25].mxu0 }
 0x2aa   :  { %v3236_v50 = vadd.f32 %v3228_v45, %v1288_v52  ;;  %v2558_v51 = vpop.f32.mrb[26].mxu0 }
 0x2ab   :  { %v3239_v40 = vadd.f32 %v2558_v51, %v3228_v45  ;;  %v1291_v54 = vpop.f32.mrb[27].mxu0  ;;  %v1880_v57 = vsel %vm1873_vm1, %v3233_v49, 0.0  ;;  %vm1481_vm2 = vcmp.ge.f32.partialorder %v3233_v49, 0.0  ;;  %v1530_v58 = vmul.f32 %v3230_v31, %v3233_v49 }
 0x2ac   :  { %v3247_v59 = vadd.f32 %v3228_v45, %v1291_v54  ;;  %1881 = vadd.xlane.f32.xlu0 %v1880_v57  ;;  %vm1479_vm3 = vcmp.ge.f32.partialorder %v3236_v50, 0.0  ;;  %v1528_v62 = vmul.f32 %v3230_v31, %v3236_v50  ;;  %v1874_v3 = vsel %vm1873_vm1, %v3236_v50, 0.0 }
 0x2ad   :  { %v1883_v0 = vsel %vm1873_vm1, %v3239_v40, 0.0  ;;  %v1578_v55 = vsel %vm1481_vm2, %v3233_v49, %v1530_v58  ;;  %v1531_v61 = vmul.f32 %v3230_v31, %v3239_v40  ;;  %vm1482_vm5 = vcmp.ge.f32.partialorder %v3239_v40, 0.0 }
 0x2ae   :  { %1884 = vadd.xlane.f32.xlu1 %v1883_v0  ;;  %v1576_v2 = vsel %vm1479_vm3, %v3236_v50, %v1528_v62  ;;  %vm1480_vm4 = vcmp.ge.f32.partialorder %v3247_v59, 0.0  ;;  %v1529_v7 = vmul.f32 %v3230_v31, %v3247_v59  ;;  %v1877_v15 = vsel %vm1873_vm1, %v3247_v59, 0.0 }
 0x2af   :  { %v1631_v4 = vmul.f32 %v3255_v63, %v1576_v2  ;;  %v1633_v16 = vmul.f32 %v3255_v63, %v1578_v55  ;;  %v1579_v20 = vsel %vm1482_vm5, %v3239_v40, %v1531_v61 }
 0x2b0   :  { %v2561_v10 = vpop.f32.mrb[28].mxu0  ;;  %1875 = vadd.xlane.f32.xlu0 %v1874_v3  ;;  %v1577_v17 = vsel %vm1480_vm4, %v3247_v59, %v1529_v7  ;;  %v1634_v8 = vmul.f32 %v3255_v63, %v1579_v20 }
 0x2b1   :  { %v1304_v12 = vpop.f32.mrb[29].mxu0  ;;  %v1680_v24 = vsel %vm1679_vm6, %v1631_v4, 0.0  ;;  %v1632_v27 = vmul.f32 %v3255_v63, %v1577_v17  ;;  %v3278_v28 = vadd.f32 %v2561_v10, %v3228_v45  ;;  %v1686_v6 = vsel %vm1679_vm6, %v1633_v16, 0.0 }
 0x2b2   :  { %v2562_v19 = vpop.f32.mrb[30].mxu0  ;;  %1878 = vadd.xlane.f32.xlu1 %v1877_v15  ;;  %v3287_v56 = vadd.f32 %v3228_v45, %v1304_v12  ;;  %v1689_v29 = vsel %vm1679_vm6, %v1634_v8, 0.0 }
 0x2b3   :  { %v1307_v23 = vpop.f32.mrb[31].mxu0  ;;  %v3283_v47 = vadd.f32 %v2562_v19, %v3228_v45  ;;  %v1683_v53 = vsel %vm1679_vm6, %v1632_v27, 0.0  ;;  %v1534_v14 = vmul.f32 %v3230_v31, %v3278_v28  ;;  %vm1485_vm7 = vcmp.ge.f32.partialorder %v3278_v28, 0.0 }
 0x2b4   :  { %1681 = vadd.xlane.f32.xlu0 %v1680_v24  ;;  %v3294_v36 = vadd.f32 %v3228_v45, %v1307_v23  ;;  %v1892_v38 = vsel %vm1873_vm1, %v3278_v28, 0.0  ;;  %v1532_v21 = vmul.f32 %v3230_v31, %v3287_v56  ;;  %vm1483_vm9 = vcmp.ge.f32.partialorder %v3287_v56, 0.0 }
 0x2b5   :  { %v1535_v5 = vmul.f32 %v3230_v31, %v3283_v47  ;;  %vm1486_vm8 = vcmp.ge.f32.partialorder %v3283_v47, 0.0  ;;  %v1582_v11 = vsel %vm1485_vm7, %v3278_v28, %v1534_v14  ;;  %v1895_v22 = vsel %vm1873_vm1, %v3283_v47, 0.0 }
 0x2b6   :  { %1687 = vadd.xlane.f32.xlu1 %v1686_v6  ;;  %v1533_v26 = vmul.f32 %v3230_v31, %v3294_v36  ;;  %v1886_v30 = vsel %vm1873_vm1, %v3287_v56, 0.0  ;;  %v1637_v9 = vmul.f32 %v3255_v63, %v1582_v11  ;;  %vm1484_vm10 = vcmp.ge.f32.partialorder %v3294_v36, 0.0 }
 0x2b7   :  { %v1583_v25 = vsel %vm1486_vm8, %v3283_v47, %v1535_v5  ;;  %v1580_v13 = vsel %vm1483_vm9, %v3287_v56, %v1532_v21  ;;  %v1889_v33 = vsel %vm1873_vm1, %v3294_v36, 0.0 }
 0x2b8   :  { %1684 = vadd.xlane.f32.xlu0 %v1683_v53  ;;  %v2565_v60 = vpop.f32.mrb[32].mxu0  ;;  %v1638_v34 = vmul.f32 %v3255_v63, %v1583_v25  ;;  %v1581_v39 = vsel %vm1484_vm10, %v3294_v36, %v1533_v26  ;;  %v1698_v42 = vsel %vm1679_vm6, %v1637_v9, 0.0  ;;  %v1635_v44 = vmul.f32 %v3255_v63, %v1580_v13 }
 0x2b9   :  { %v1320_v32 = vpop.f32.mrb[33].mxu0  ;;  %v3322_v48 = vadd.f32 %v2565_v60, %v3228_v45  ;;  %v1636_v52 = vmul.f32 %v3255_v63, %v1581_v39 }
 0x2ba   :  { %1690 = vadd.xlane.f32.xlu1 %v1689_v29  ;;  %v2566_v1 = vpop.f32.mrb[34].mxu0  ;;  %v1701_v37 = vsel %vm1679_vm6, %v1638_v34, 0.0  ;;  %v1692_v54 = vsel %vm1679_vm6, %v1635_v44, 0.0  ;;  %v3331_v57 = vadd.f32 %v3228_v45, %v1320_v32 }
 0x2bb   :  { %v1323_v43 = vpop.f32.mrb[35].mxu0  ;;  %v3327_v51 = vadd.f32 %v2566_v1, %v3228_v45  ;;  %v1538_v58 = vmul.f32 %v3230_v31, %v3322_v48  ;;  %v1695_v0 = vsel %vm1679_vm6, %v1636_v52, 0.0  ;;  %vm1489_vm11 = vcmp.ge.f32.partialorder %v3322_v48, 0.0 }
 0x2bc   :  { %1893 = vadd.xlane.f32.xlu0 %v1892_v38  ;;  %v3342_v55 = vadd.f32 %v3228_v45, %v1323_v43  ;;  %v1904_v4 = vsel %vm1873_vm1, %v3322_v48, 0.0  ;;  %v1536_v12 = vmul.f32 %v3230_v31, %v3331_v57  ;;  %vm1487_vm13 = vcmp.ge.f32.partialorder %v3331_v57, 0.0 }
 0x2bd   :  { %v1539_v61 = vmul.f32 %v3230_v31, %v3327_v51  ;;  %vm1490_vm12 = vcmp.ge.f32.partialorder %v3327_v51, 0.0  ;;  %v1586_v10 = vsel %vm1489_vm11, %v3322_v48, %v1538_v58  ;;  %v1907_v15 = vsel %vm1873_vm1, %v3327_v51, 0.0 }
 0x2be   :  { %1896 = vadd.xlane.f32.xlu1 %v1895_v22  ;;  %v1537_v17 = vmul.f32 %v3230_v31, %v3342_v55  ;;  %v1898_v19 = vsel %vm1873_vm1, %v3331_v57, 0.0  ;;  %v1641_v20 = vmul.f32 %v3255_v63, %v1586_v10  ;;  %vm1488_vm14 = vcmp.ge.f32.partialorder %v3342_v55, 0.0 }
 0x2bf   :  { %v1587_v16 = vsel %vm1490_vm12, %v3327_v51, %v1539_v61  ;;  %v1584_v23 = vsel %vm1487_vm13, %v3331_v57, %v1536_v12  ;;  %v1901_v27 = vsel %vm1873_vm1, %v3342_v55, 0.0 }
 0x2c0   :  { %1887 = vadd.xlane.f32.xlu0 %v1886_v30  ;;  %v2569_v18 = vpop.f32.mrb[36].mxu0  ;;  %v1642_v6 = vmul.f32 %v3255_v63, %v1587_v16  ;;  %v1585_v53 = vsel %vm1488_vm14, %v3342_v55, %v1537_v17  ;;  %v1710_v14 = vsel %vm1679_vm6, %v1641_v20, 0.0  ;;  %v1639_v29 = vmul.f32 %v3255_v63, %v1584_v23 }
 0x2c1   :  { %v1336_v35 = vpop.f32.mrb[37].mxu0  ;;  %v3382_v1 = vadd.f32 %v2569_v18, %v3228_v45  ;;  %v1640_v38 = vmul.f32 %v3255_v63, %v1585_v53 }
 0x2c2   :  { %1890 = vadd.xlane.f32.xlu1 %v1889_v33  ;;  %v2570_v41 = vpop.f32.mrb[38].mxu0  ;;  %v1713_v5 = vsel %vm1679_vm6, %v1642_v6, 0.0  ;;  %v1704_v11 = vsel %vm1679_vm6, %v1639_v29, 0.0  ;;  %v3391_v21 = vadd.f32 %v3228_v45, %v1336_v35 }
 0x2c3   :  { %v1339_v46 = vpop.f32.mrb[39].mxu0  ;;  %v3387_v43 = vadd.f32 %v2570_v41, %v3228_v45  ;;  %v1542_v22 = vmul.f32 %v3230_v31, %v3382_v1  ;;  %v1707_v26 = vsel %vm1679_vm6, %v1640_v38, 0.0  ;;  %vm1493_vm15 = vcmp.ge.f32.partialorder %v3382_v1, 0.0 }
 0x2c4   :  { %1699 = vadd.xlane.f32.xlu0 %v1698_v42  ;;  %v3402_v9 = vadd.f32 %v3228_v45, %v1339_v46  ;;  %v1916_v33 = vsel %vm1873_vm1, %v3382_v1, 0.0  ;;  %v1540_v39 = vmul.f32 %v3230_v31, %v3391_v21  ;;  %vm1491_vm2 = vcmp.ge.f32.partialorder %v3391_v21, 0.0 }
 0x2c5   :  { %v1543_v13 = vmul.f32 %v3230_v31, %v3387_v43  ;;  %vm1494_vm0 = vcmp.ge.f32.partialorder %v3387_v43, 0.0  ;;  %v1590_v35 = vsel %vm1493_vm15, %v3382_v1, %v1542_v22  ;;  %v1919_v41 = vsel %vm1873_vm1, %v3387_v43, 0.0 }
 0x2c6   :  { %1702 = vadd.xlane.f32.xlu1 %v1701_v37  ;;  %v1541_v44 = vmul.f32 %v3230_v31, %v3402_v9  ;;  %v1910_v46 = vsel %vm1873_vm1, %v3391_v21, 0.0  ;;  %v1645_v37 = vmul.f32 %v3255_v63, %v1590_v35  ;;  %vm1492_vm3 = vcmp.ge.f32.partialorder %v3402_v9, 0.0 }
 0x2c7   :  { %v1591_v42 = vsel %vm1494_vm0, %v3387_v43, %v1543_v13  ;;  %v1588_v52 = vsel %vm1491_vm2, %v3391_v21, %v1540_v39  ;;  %v1913_v58 = vsel %vm1873_vm1, %v3402_v9, 0.0 }
 0x2c8   :  { %1693 = vadd.xlane.f32.xlu0 %v1692_v54  ;;  %v3335_v62 = vpop.f32.mrb[40].mxu0  ;;  %v1722_v12 = vsel %vm1679_vm6, %v1645_v37, 0.0 }
 0x2c9   :  { %v3339_v2 = vpop.f32.mrb[41].mxu0  ;;  %v3443_v17 = vadd.f32 %v3335_v62, %v3228_v45 }
 0x2ca   :  { %1696 = vadd.xlane.f32.xlu1 %v1695_v0  ;;  %v3346_v3 = vpop.f32.mrb[42].mxu0  ;;  %v1646_v0 = vmul.f32 %v3255_v63, %v1591_v42  ;;  %v3454_v6 = vadd.f32 %v3228_v45, %v3339_v2 }
 0x2cb   :  { %v3351_v7 = vpop.f32.mrb[43].mxu0  ;;  %v3449_v23 = vadd.f32 %v3346_v3, %v3228_v45  ;;  %v1546_v62 = vmul.f32 %v3230_v31, %v3443_v17  ;;  %vm1497_vm4 = vcmp.ge.f32.partialorder %v3443_v17, 0.0  ;;  %v1928_v38 = vsel %vm1873_vm1, %v3443_v17, 0.0 }
 0x2cc   :  { %1905 = vadd.xlane.f32.xlu0 %v1904_v4  ;;  %v1589_v4 = vsel %vm1492_vm3, %v3402_v9, %v1541_v44  ;;  %v3466_v3 = vadd.f32 %v3228_v45, %v3351_v7  ;;  %v1544_v7 = vmul.f32 %v3230_v31, %v3454_v6  ;;  %vm1495_vm7 = vcmp.ge.f32.partialorder %v3454_v6, 0.0 }
 0x2cd   :  { %v1644_v20 = vmul.f32 %v3255_v63, %v1589_v4  ;;  %v1547_v2 = vmul.f32 %v3230_v31, %v3449_v23  ;;  %vm1498_vm5 = vcmp.ge.f32.partialorder %v3449_v23, 0.0  ;;  %v1594_v22 = vsel %vm1497_vm4, %v3443_v17, %v1546_v62 }
 0x2ce   :  { %1908 = vadd.xlane.f32.xlu1 %v1907_v15  ;;  %v1643_v15 = vmul.f32 %v3255_v63, %v1588_v52  ;;  %v1922_v35 = vsel %vm1873_vm1, %v3454_v6, 0.0  ;;  %v1649_v39 = vmul.f32 %v3255_v63, %v1594_v22  ;;  %vm1496_vm8 = vcmp.ge.f32.partialorder %v3466_v3, 0.0 }
 0x2cf   :  { %v1595_v13 = vsel %vm1498_vm5, %v3449_v23, %v1547_v2  ;;  %v1925_v44 = vsel %vm1873_vm1, %v3466_v3, 0.0 }
 0x2d0   :  { %1899 = vadd.xlane.f32.xlu0 %v1898_v19  ;;  %v3367_v24 = vpop.f32.mrb[44].mxu0  ;;  %v1725_v19 = vsel %vm1679_vm6, %v1646_v0, 0.0  ;;  %v1734_v0 = vsel %vm1679_vm6, %v1649_v39, 0.0 }
 0x2d1   :  { %v3372_v8 = vpop.f32.mrb[45].mxu0 }
 0x2d2   :  { %1902 = vadd.xlane.f32.xlu1 %v1901_v27  ;;  %v3375_v60 = vpop.f32.mrb[46].mxu0  ;;  %v1716_v27 = vsel %vm1679_vm6, %v1643_v15, 0.0  ;;  %v3507_v15 = vadd.f32 %v3367_v24, %v3228_v45 }
 0x2d3   :  { %v3379_v32 = vpop.f32.mrb[47].mxu0 }
 0x2d4   :  { %1711 = vadd.xlane.f32.xlu0 %v1710_v14  ;;  %v1719_v14 = vsel %vm1679_vm6, %v1644_v20, 0.0  ;;  %v1550_v24 = vmul.f32 %v3230_v31, %v3507_v15  ;;  %vm1501_vm9 = vcmp.ge.f32.partialorder %v3507_v15, 0.0 }
 0x2d6   :  { %1714 = vadd.xlane.f32.xlu1 %v1713_v5 }
 0x2d8   :  { %1705 = vadd.xlane.f32.xlu0 %v1704_v11  ;;  %v3395_v25 = vpop.f32.mrb[48].mxu0 }
 0x2d9   :  { %v3399_v30 = vpop.f32.mrb[49].mxu0 }
 0x2da   :  { %1708 = vadd.xlane.f32.xlu1 %v1707_v26  ;;  %v3406_v18 = vpop.f32.mrb[50].mxu0  ;;  %v1931_v26 = vsel %vm1873_vm1, %v3449_v23, 0.0 }
 0x2db   :  { %v3411_v34 = vpop.f32.mrb[51].mxu0 }
 0x2dc   :  { %1917 = vadd.xlane.f32.xlu0 %v1916_v33  ;;  %v1545_v33 = vmul.f32 %v3230_v31, %v3466_v3 }
 0x2de   :  { %1920 = vadd.xlane.f32.xlu1 %v1919_v41  ;;  %v1592_v41 = vsel %vm1495_vm7, %v3454_v6, %v1544_v7  ;;  %v1593_v52 = vsel %vm1496_vm8, %v3466_v3, %v1545_v33  ;;  %v1598_v33 = vsel %vm1501_vm9, %v3507_v15, %v1550_v24 }
 0x2df   :  { %v1647_v4 = vmul.f32 %v3255_v63, %v1592_v41  ;;  %v1648_v20 = vmul.f32 %v3255_v63, %v1593_v52 }
 0x2e0   :  { %1911 = vadd.xlane.f32.xlu0 %v1910_v46  ;;  %v3427_v54 = vpop.f32.mrb[52].mxu0  ;;  %v1650_v46 = vmul.f32 %v3255_v63, %v1595_v13 }
 0x2e1   :  { %v3432_v61 = vpop.f32.mrb[53].mxu0  ;;  %v1728_v62 = vsel %vm1679_vm6, %v1647_v4, 0.0 }
 0x2e2   :  { %1914 = vadd.xlane.f32.xlu1 %v1913_v58  ;;  %v3435_v10 = vpop.f32.mrb[54].mxu0 }
 0x2e3   :  { %v3439_v16 = vpop.f32.mrb[55].mxu0 }
 0x2e4   :  { %1723 = vadd.xlane.f32.xlu0 %v1722_v12 }
 0x2e6   :  { %1726 = vadd.xlane.f32.xlu1 %v1725_v19  ;;  %v1737_v19 = vsel %vm1679_vm6, %v1650_v46, 0.0  ;;  %v1653_v46 = vmul.f32 %v3255_v63, %v1598_v33  ;;  %v3571_v33 = vadd.f32 %v3395_v25, %v3228_v45 }
 0x2e8   :  { %1717 = vadd.xlane.f32.xlu0 %v1716_v27  ;;  %v3458_v53 = vpop.f32.mrb[56].mxu0  ;;  %v3513_v27 = vadd.f32 %v3375_v60, %v3228_v45  ;;  %v3530_v60 = vadd.f32 %v3228_v45, %v3379_v32  ;;  %v1554_v25 = vmul.f32 %v3230_v31, %v3571_v33  ;;  %vm1505_vm13 = vcmp.ge.f32.partialorder %v3571_v33, 0.0 }
 0x2e9   :  { %v3462_v29 = vpop.f32.mrb[57].mxu0 }
 0x2ea   :  { %1720 = vadd.xlane.f32.xlu1 %v1719_v14  ;;  %v3470_v5 = vpop.f32.mrb[58].mxu0  ;;  %v3518_v14 = vadd.f32 %v3228_v45, %v3372_v8  ;;  %v1551_v8 = vmul.f32 %v3230_v31, %v3513_v27  ;;  %vm1502_vm10 = vcmp.ge.f32.partialorder %v3513_v27, 0.0  ;;  %v1549_v41 = vmul.f32 %v3230_v31, %v3530_v60 }
 0x2eb   :  { %v3475_v11 = vpop.f32.mrb[59].mxu0  ;;  %vm1500_vm12 = vcmp.ge.f32.partialorder %v3530_v60, 0.0  ;;  %v1937_v4 = vsel %vm1873_vm1, %v3530_v60, 0.0 }
 0x2ec   :  { %1929 = vadd.xlane.f32.xlu0 %v1928_v38  ;;  %v1731_v38 = vsel %vm1679_vm6, %v1648_v20, 0.0  ;;  %v1548_v32 = vmul.f32 %v3230_v31, %v3518_v14  ;;  %vm1499_vm11 = vcmp.ge.f32.partialorder %v3518_v14, 0.0  ;;  %v1599_v39 = vsel %vm1502_vm10, %v3513_v27, %v1551_v8 }
 0x2ee   :  { %1932 = vadd.xlane.f32.xlu1 %v1931_v26  ;;  %v1940_v26 = vsel %vm1873_vm1, %v3507_v15, 0.0  ;;  %v1596_v52 = vsel %vm1499_vm11, %v3518_v14, %v1548_v32 }
 0x2ef   :  { %v1651_v8 = vmul.f32 %v3255_v63, %v1596_v52  ;;  %v3590_v52 = vadd.f32 %v3228_v45, %v3411_v34 }
 0x2f0   :  { %1923 = vadd.xlane.f32.xlu0 %v1922_v35  ;;  %v3491_v42 = vpop.f32.mrb[60].mxu0  ;;  %v1943_v35 = vsel %vm1873_vm1, %v3513_v27, 0.0 }
 0x2f1   :  { %v3496_v37 = vpop.f32.mrb[61].mxu0  ;;  %vm1504_vm0 = vcmp.ge.f32.partialorder %v3590_v52, 0.0 }
 0x2f2   :  { %1926 = vadd.xlane.f32.xlu1 %v1925_v44  ;;  %v3499_v58 = vpop.f32.mrb[62].mxu0  ;;  %v1934_v44 = vsel %vm1873_vm1, %v3518_v14, 0.0 }
 0x2f3   :  { %v3503_v12 = vpop.f32.mrb[63].mxu0 }
 0x2f4   :  { %1735 = vadd.xlane.f32.xlu0 %v1734_v0 }
 0x2f6   :  { %1738 = vadd.xlane.f32.xlu1 %v1737_v19  ;;  %v1654_v19 = vmul.f32 %v3255_v63, %v1599_v39  ;;  %v3577_v39 = vadd.f32 %v3406_v18, %v3228_v45 }
 0x2f8   :  { %1729 = vadd.xlane.f32.xlu0 %v1728_v62  ;;  %v3522_v2 = vpop.f32.mrb[64].mxu0  ;;  %v1597_v62 = vsel %vm1500_vm12, %v3530_v60, %v1549_v41  ;;  %v1749_v32 = vsel %vm1679_vm6, %v1654_v19, 0.0  ;;  %v1740_v41 = vsel %vm1679_vm6, %v1651_v8, 0.0  ;;  %v1555_v18 = vmul.f32 %v3230_v31, %v3577_v39 }
 0x2f9   :  { %v3526_v22 = vpop.f32.mrb[65].mxu0  ;;  %vm1506_vm14 = vcmp.ge.f32.partialorder %v3577_v39, 0.0 }
 0x2fa   :  { %1732 = vadd.xlane.f32.xlu1 %v1731_v38  ;;  %v3534_v7 = vpop.f32.mrb[66].mxu0  ;;  %v1746_v38 = vsel %vm1679_vm6, %v1653_v46, 0.0  ;;  %v1603_v34 = vsel %vm1506_vm14, %v3577_v39, %v1555_v18 }
 0x2fb   :  { %v3539_v13 = vpop.f32.mrb[67].mxu0 }
 0x2fc   :  { %1941 = vadd.xlane.f32.xlu0 %v1940_v26 }
 0x2fe   :  { %1944 = vadd.xlane.f32.xlu1 %v1943_v35  ;;  %v1652_v35 = vmul.f32 %v3255_v63, %v1597_v62  ;;  %v1955_v62 = vsel %vm1873_vm1, %v3577_v39, 0.0 }
 0x300   :  { %1935 = vadd.xlane.f32.xlu0 %v1934_v44  ;;  %v3555_v0 = vpop.f32.mrb[68].mxu0  ;;  %v3582_v44 = vadd.f32 %v3228_v45, %v3399_v30  ;;  %v1743_v46 = vsel %vm1679_vm6, %v1652_v35, 0.0  ;;  %v1952_v30 = vsel %vm1873_vm1, %v3571_v33, 0.0 }
 0x301   :  { %v3560_v20 = vpop.f32.mrb[69].mxu0 }
 0x302   :  { %1938 = vadd.xlane.f32.xlu1 %v1937_v4  ;;  %v3563_v24 = vpop.f32.mrb[70].mxu0  ;;  %v1602_v4 = vsel %vm1505_vm13, %v3571_v33, %v1554_v25  ;;  %v1552_v19 = vmul.f32 %v3230_v31, %v3582_v44  ;;  %vm1503_vm15 = vcmp.ge.f32.partialorder %v3582_v44, 0.0  ;;  %v1946_v8 = vsel %vm1873_vm1, %v3582_v44, 0.0 }
 0x303   :  { %v3567_v26 = vpop.f32.mrb[71].mxu0  ;;  %v1658_v25 = vmul.f32 %v3255_v63, %v1603_v34 }
 0x304   :  { %1747 = vadd.xlane.f32.xlu0 %v1746_v38  ;;  %v1553_v38 = vmul.f32 %v3230_v31, %v3590_v52  ;;  %v1600_v35 = vsel %vm1503_vm15, %v3582_v44, %v1552_v19 }
 0x306   :  { %1750 = vadd.xlane.f32.xlu1 %v1749_v32  ;;  %v1657_v32 = vmul.f32 %v3255_v63, %v1602_v4  ;;  %v3619_v4 = vadd.f32 %v3427_v54, %v3228_v45 }
 0x308   :  { %1741 = vadd.xlane.f32.xlu0 %v1740_v41  ;;  %v1949_v41 = vsel %vm1873_vm1, %v3590_v52, 0.0  ;;  %v1758_v18 = vsel %vm1679_vm6, %v1657_v32, 0.0  ;;  %v1558_v54 = vmul.f32 %v3230_v31, %v3619_v4  ;;  %vm1509_vm2 = vcmp.ge.f32.partialorder %v3619_v4, 0.0 }
 0x30a   :  { %1744 = vadd.xlane.f32.xlu1 %v1743_v46  ;;  %v1601_v46 = vsel %vm1504_vm0, %v3590_v52, %v1553_v38  ;;  %v3630_v38 = vadd.f32 %v3228_v45, %v3432_v61  ;;  %v1964_v61 = vsel %vm1873_vm1, %v3619_v4, 0.0 }
 0x30b   :  { %v1656_v19 = vmul.f32 %v3255_v63, %v1601_v46 }
 0x30c   :  { %1953 = vadd.xlane.f32.xlu0 %v1952_v30  ;;  %v1655_v30 = vmul.f32 %v3255_v63, %v1600_v35  ;;  %v3638_v35 = vadd.f32 %v3228_v45, %v3439_v16  ;;  %vm1507_vm4 = vcmp.ge.f32.partialorder %v3630_v38, 0.0 }
 0x30d   :  { %v1755_v32 = vsel %vm1679_vm6, %v1656_v19, 0.0 }
 0x30e   :  { %1956 = vadd.xlane.f32.xlu1 %v1955_v62  ;;  %v1761_v62 = vsel %vm1679_vm6, %v1658_v25, 0.0  ;;  %v1752_v34 = vsel %vm1679_vm6, %v1655_v30, 0.0  ;;  %4172 = vst [vmem:[#allocation5_spill] sm:$0xff] %v3638_v35  ;;  %v1556_v25 = vmul.f32 %v3230_v31, %v3630_v38  ;;  %v1958_v30 = vsel %vm1873_vm1, %v3630_v38, 0.0 }
 0x30f   :  { %vm1508_vm5 = vcmp.ge.f32.partialorder %v3638_v35, 0.0 }
 0x310   :  { %1947 = vadd.xlane.f32.xlu0 %v1946_v8  ;;  %v3625_v8 = vadd.f32 %v3435_v10, %v3228_v45  ;;  %v1604_v19 = vsel %vm1507_vm4, %v3630_v38, %v1556_v25 }
 0x312   :  { %1950 = vadd.xlane.f32.xlu1 %v1949_v41  ;;  %v1559_v10 = vmul.f32 %v3230_v31, %v3625_v8  ;;  %vm1510_vm3 = vcmp.ge.f32.partialorder %v3625_v8, 0.0  ;;  %v1606_v41 = vsel %vm1509_vm2, %v3619_v4, %v1558_v54  ;;  %v1967_v46 = vsel %vm1873_vm1, %v3625_v8, 0.0 }
 0x314   :  { %1759 = vadd.xlane.f32.xlu0 %v1758_v18  ;;  %v1607_v16 = vsel %vm1510_vm3, %v3625_v8, %v1559_v10  ;;  %v1557_v18 = vmul.f32 %v3230_v31, %v3638_v35 }
 0x315   :  { %v1662_v54 = vmul.f32 %v3255_v63, %v1607_v16 }
 0x316   :  { %1762 = vadd.xlane.f32.xlu1 %v1761_v62  ;;  %v1661_v62 = vmul.f32 %v3255_v63, %v1606_v41  ;;  %v3667_v41 = vadd.f32 %v3458_v53, %v3228_v45 }
 0x318   :  { %1753 = vadd.xlane.f32.xlu0 %v1752_v34  ;;  %v1961_v34 = vsel %vm1873_vm1, %v3638_v35, 0.0  ;;  %v1770_v10 = vsel %vm1679_vm6, %v1661_v62, 0.0  ;;  %4173 = vst [vmem:[#allocation6_spill] sm:$0xff] %v3667_v41  ;;  %v1562_v53 = vmul.f32 %v3230_v31, %v3667_v41  ;;  %vm1513_vm7 = vcmp.ge.f32.partialorder %v3667_v41, 0.0 }
 0x31a   :  { %1756 = vadd.xlane.f32.xlu1 %v1755_v32  ;;  %v1605_v32 = vsel %vm1508_vm5, %v3638_v35, %v1557_v18  ;;  %v3678_v18 = vadd.f32 %v3228_v45, %v3462_v29  ;;  %v1976_v29 = vsel %vm1873_vm1, %v3667_v41, 0.0 }
 0x31b   :  { %v1660_v25 = vmul.f32 %v3255_v63, %v1605_v32 }
 0x31c   :  { %1965 = vadd.xlane.f32.xlu0 %v1964_v61  ;;  %v1659_v61 = vmul.f32 %v3255_v63, %v1604_v19  ;;  %4175 = vst [vmem:[#allocation8_spill] sm:$0xff] %v3678_v18  ;;  %v3686_v19 = vadd.f32 %v3228_v45, %v3475_v11  ;;  %vm1511_vm9 = vcmp.ge.f32.partialorder %v3678_v18, 0.0 }
 0x31d   :  { %v1767_v62 = vsel %vm1679_vm6, %v1660_v25, 0.0 }
 0x31e   :  { %1968 = vadd.xlane.f32.xlu1 %v1967_v46  ;;  %v1773_v46 = vsel %vm1679_vm6, %v1662_v54, 0.0  ;;  %v1764_v16 = vsel %vm1679_vm6, %v1659_v61, 0.0  ;;  %4176 = vst [vmem:[#allocation9_spill] sm:$0xff] %v3686_v19  ;;  %v1560_v54 = vmul.f32 %v3230_v31, %v3678_v18  ;;  %v1970_v61 = vsel %vm1873_vm1, %v3678_v18, 0.0 }
 0x31f   :  { %vm1512_vm10 = vcmp.ge.f32.partialorder %v3686_v19, 0.0 }
 0x320   :  { %1959 = vadd.xlane.f32.xlu0 %v1958_v30  ;;  %v3673_v30 = vadd.f32 %v3470_v5, %v3228_v45  ;;  %v1608_v25 = vsel %vm1511_vm9, %v3678_v18, %v1560_v54 }
 0x322   :  { %1962 = vadd.xlane.f32.xlu1 %v1961_v34  ;;  %4174 = vst [vmem:[#allocation7_spill] sm:$0xff] %v3673_v30  ;;  %v1563_v5 = vmul.f32 %v3230_v31, %v3673_v30  ;;  %vm1514_vm8 = vcmp.ge.f32.partialorder %v3673_v30, 0.0  ;;  %v1610_v34 = vsel %vm1513_vm7, %v3667_v41, %v1562_v53  ;;  %v1979_v32 = vsel %vm1873_vm1, %v3673_v30, 0.0 }
 0x324   :  { %1771 = vadd.xlane.f32.xlu0 %v1770_v10  ;;  %v1611_v11 = vsel %vm1514_vm8, %v3673_v30, %v1563_v5  ;;  %v1561_v10 = vmul.f32 %v3230_v31, %v3686_v19  ;;  %v3764_v30 = vadd.f32 %v3522_v2, %v3228_v45 }
 0x325   :  { %v1666_v53 = vmul.f32 %v3255_v63, %v1611_v11 }
 0x326   :  { %1774 = vadd.xlane.f32.xlu1 %v1773_v46  ;;  %v1665_v46 = vmul.f32 %v3255_v63, %v1610_v34  ;;  %v3715_v34 = vadd.f32 %v3491_v42, %v3228_v45  ;;  %vm1521_vm15 = vcmp.ge.f32.partialorder %v3764_v30, 0.0 }
 0x328   :  { %1765 = vadd.xlane.f32.xlu0 %v1764_v16  ;;  %v1973_v16 = vsel %vm1873_vm1, %v3686_v19, 0.0  ;;  %v1782_v5 = vsel %vm1679_vm6, %v1665_v46, 0.0  ;;  %4177 = vst [vmem:[#allocation10_spill] sm:$0xff] %v3715_v34  ;;  %v1566_v42 = vmul.f32 %v3230_v31, %v3715_v34  ;;  %vm1517_vm11 = vcmp.ge.f32.partialorder %v3715_v34, 0.0 }
 0x32a   :  { %1768 = vadd.xlane.f32.xlu1 %v1767_v62  ;;  %v1609_v62 = vsel %vm1512_vm10, %v3686_v19, %v1561_v10  ;;  %v3726_v10 = vadd.f32 %v3228_v45, %v3496_v37  ;;  %v1988_v37 = vsel %vm1873_vm1, %v3715_v34, 0.0 }
 0x32b   :  { %v1664_v54 = vmul.f32 %v3255_v63, %v1609_v62  ;;  %v1614_v62 = vsel %vm1517_vm11, %v3715_v34, %v1566_v42  ;;  %v3752_v42 = vstv %s2218_s24 }
 0x32c   :  { %1977 = vadd.xlane.f32.xlu0 %v1976_v29  ;;  %v1663_v29 = vmul.f32 %v3255_v63, %v1608_v25  ;;  %4179 = vst [vmem:[#allocation12_spill] sm:$0xff] %v3726_v10  ;;  %vm1515_vm13 = vcmp.ge.f32.partialorder %v3726_v10, 0.0 }
 0x32d   :  { %v1779_v25 = vsel %vm1679_vm6, %v1664_v54, 0.0 }
 0x32e   :  { %1980 = vadd.xlane.f32.xlu1 %v1979_v32  ;;  %v1785_v32 = vsel %vm1679_vm6, %v1666_v53, 0.0  ;;  %v1776_v11 = vsel %vm1679_vm6, %v1663_v29, 0.0 }
 0x330   :  { %1971 = vadd.xlane.f32.xlu0 %v1970_v61  ;;  %v3721_v61 = vadd.f32 %v3499_v58, %v3228_v45  ;;  %v3734_v58 = vadd.f32 %v3228_v45, %v3503_v12 }
 0x332   :  { %1974 = vadd.xlane.f32.xlu1 %v1973_v16  ;;  %4178 = vst [vmem:[#allocation11_spill] sm:$0xff] %v3721_v61  ;;  %4180 = vst [vmem:[#allocation13_spill] sm:$0xff] %v3734_v58  ;;  %v1567_v16 = vmul.f32 %v3230_v31, %v3721_v61  ;;  %vm1518_vm12 = vcmp.ge.f32.partialorder %v3721_v61, 0.0  ;;  %v1991_v12 = vsel %vm1873_vm1, %v3721_v61, 0.0  ;;  %v1565_v54 = vmul.f32 %v3230_v31, %v3734_v58 }
 0x333   :  { %vm1516_vm14 = vcmp.ge.f32.partialorder %v3734_v58, 0.0 }
 0x334   :  { %1783 = vadd.xlane.f32.xlu0 %v1782_v5  ;;  %v1564_v5 = vmul.f32 %v3230_v31, %v3726_v10  ;;  %v1613_v18 = vsel %vm1516_vm14, %v3734_v58, %v1565_v54 }
 0x335   :  { %v1668_v2 = vmul.f32 %v3255_v63, %v1613_v18 }
 0x336   :  { %1786 = vadd.xlane.f32.xlu1 %v1785_v32  ;;  %v1615_v32 = vsel %vm1518_vm12, %v3721_v61, %v1567_v16  ;;  %v1612_v34 = vsel %vm1515_vm13, %v3726_v10, %v1564_v5  ;;  %v1985_v16 = vsel %vm1873_vm1, %v3734_v58, 0.0 }
 0x337   :  { %v1667_v5 = vmul.f32 %v3255_v63, %v1612_v34 }
 0x338   :  { %1777 = vadd.xlane.f32.xlu0 %v1776_v11 }
 0x339   :  { %v1882_v46 = vpop.xlane.xlu0 %1881 }
 0x33a   :  { %1780 = vadd.xlane.f32.xlu1 %v1779_v25  ;;  %v1982_v25 = vsel %vm1873_vm1, %v3726_v10, 0.0 }
 0x33b   :  { %v1885_v53 = vpop.xlane.xlu1 %1884 }
 0x33c   :  { %1989 = vadd.xlane.f32.xlu0 %v1988_v37  ;;  %v1669_v37 = vmul.f32 %v3255_v63, %v1614_v62 }
 0x33d   :  { %v1876_v29 = vpop.xlane.xlu0 %1875 }
 0x33e   :  { %1992 = vadd.xlane.f32.xlu1 %v1991_v12  ;;  %v1670_v12 = vmul.f32 %v3255_v63, %v1615_v32  ;;  %v2019_v10 = vmul.f32 0.25, %v1876_v29  ;;  %v1570_v29 = vmul.f32 %v3230_v31, %v3764_v30 }
 0x33f   :  { %v1879_v11 = vpop.xlane.xlu1 %1878 }
 0x340   :  { %1983 = vadd.xlane.f32.xlu0 %v1982_v25  ;;  %v1794_v25 = vsel %vm1679_vm6, %v1669_v37, 0.0  ;;  %v1797_v54 = vsel %vm1679_vm6, %v1670_v12, 0.0  ;;  %v2020_v12 = vmul.f32 0.25, %v1879_v11 }
 0x341   :  { %v1682_v19 = vpop.xlane.xlu0 %1681 }
 0x342   :  { %v1825_v61 = vadd.f32 %v3752_v42, %v1682_v19  ;;  %1986 = vadd.xlane.f32.xlu1 %v1985_v16  ;;  %v3772_v19 = vadd.f32 %v3534_v7, %v3228_v45  ;;  %v2021_v16 = vmul.f32 0.25, %v1882_v46  ;;  %v1788_v7 = vsel %vm1679_vm6, %v1667_v5, 0.0 }
 0x343   :  { %v1688_v62 = vpop.xlane.xlu1 %1687  ;;  %v2022_v46 = vmul.f32 0.25, %v1885_v53 }
 0x344   :  { %v2067_v41 = vadd.f32 %v1825_v61, %v3236_v50  ;;  %v1827_v35 = vadd.f32 %v3752_v42, %v1688_v62  ;;  %1795 = vadd.xlane.f32.xlu0 %v1794_v25  ;;  %v3780_v50 = vadd.f32 %v3228_v45, %v3526_v22  ;;  %v3793_v22 = vadd.f32 %v3228_v45, %v3539_v13 }
 0x345   :  { %v1685_v32 = vpop.xlane.xlu0 %1684  ;;  %v1571_v11 = vmul.f32 %v3230_v31, %v3772_v19  ;;  %v2000_v62 = vsel %vm1873_vm1, %v3764_v30, 0.0  ;;  %vm1522_vm0 = vcmp.ge.f32.partialorder %v3772_v19, 0.0  ;;  %v1618_v25 = vsel %vm1521_vm15, %v3764_v30, %v1570_v29 }
 0x346   :  { %v2115_v58 = vsub.f32 %v2067_v41, %v2019_v10  ;;  %v2069_v37 = vadd.f32 %v1827_v35, %v3233_v49  ;;  %v1826_v34 = vadd.f32 %v3752_v42, %v1685_v32  ;;  %1798 = vadd.xlane.f32.xlu1 %v1797_v54  ;;  %v1791_v10 = vsel %vm1679_vm6, %v1668_v2, 0.0 }
 0x347   :  { %v1691_v61 = vpop.xlane.xlu1 %1690  ;;  %v2003_v32 = vsel %vm1873_vm1, %v3772_v19, 0.0  ;;  %vm1519_vm2 = vcmp.ge.f32.partialorder %v3780_v50, 0.0  ;;  %v1619_v54 = vsel %vm1522_vm0, %v3772_v19, %v1571_v11  ;;  %v1569_v2 = vmul.f32 %v3230_v31, %v3793_v22 }
 0x348   :  { %2163 = vst.msk [vmem:[%s4162_s8] sm:$0xff] %vm1873_vm1, %v2115_v58  ;;  %v2117_v49 = vsub.f32 %v2069_v37, %v2021_v16  ;;  %v2068_v35 = vadd.f32 %v1826_v34, %v3247_v59  ;;  %v1828_v41 = vadd.f32 %v3752_v42, %v1691_v61  ;;  %1789 = vadd.xlane.f32.xlu0 %v1788_v7  ;;  %v1994_v34 = vsel %vm1873_vm1, %v3780_v50, 0.0 }
 0x349   :  { %v1894_v18 = vpop.xlane.xlu0 %1893  ;;  %v3826_v16 = vadd.f32 %v3555_v0, %v3228_v45  ;;  %v1673_v61 = vmul.f32 %v3255_v63, %v1618_v25  ;;  %vm1520_vm3 = vcmp.ge.f32.partialorder %v3793_v22, 0.0  ;;  %v3835_v29 = vadd.f32 %v3563_v24, %v3228_v45 }
 0x34a   :  { %2165 = vst.msk [vmem:[%s4162_s8 + $0x10] sm:$0xff] %vm1873_vm1, %v2117_v49  ;;  %v2116_v58 = vsub.f32 %v2068_v35, %v2020_v12  ;;  %v2070_v59 = vadd.f32 %v1828_v41, %v3239_v40  ;;  %1792 = vadd.xlane.f32.xlu1 %v1791_v10  ;;  %v1568_v40 = vmul.f32 %v3230_v31, %v3780_v50  ;;  %v1997_v0 = vsel %vm1873_vm1, %v3793_v22, 0.0 }
 0x34b   :  { %v1897_v13 = vpop.xlane.xlu1 %1896  ;;  %v1674_v49 = vmul.f32 %v3255_v63, %v1619_v54  ;;  %v1617_v41 = vsel %vm1520_vm3, %v3793_v22, %v1569_v2  ;;  %v3844_v10 = vadd.f32 %v3228_v45, %v3560_v20  ;;  %v2025_v11 = vmul.f32 0.25, %v1894_v18 }
 0x34c   :  { %2164 = vst.msk [vmem:[%s4162_s8 + $0x8] sm:$0xff] %vm1873_vm1, %v2116_v58  ;;  %v2118_v53 = vsub.f32 %v2070_v59, %v2022_v46  ;;  %2001 = vadd.xlane.f32.xlu0 %v2000_v62  ;;  %v1616_v7 = vsel %vm1519_vm2, %v3780_v50, %v1568_v40  ;;  %v1806_v58 = vsel %vm1679_vm6, %v1673_v61, 0.0  ;;  %v1574_v59 = vmul.f32 %v3230_v31, %v3826_v16 }
 0x34d   :  { %v1888_v5 = vpop.xlane.xlu0 %1887  ;;  %v1671_v24 = vmul.f32 %v3255_v63, %v1616_v7  ;;  %vm1525_vm4 = vcmp.ge.f32.partialorder %v3826_v16, 0.0  ;;  %v3855_v20 = vadd.f32 %v3228_v45, %v3567_v26  ;;  %v1809_v40 = vsel %vm1679_vm6, %v1674_v49, 0.0 }
 0x34e   :  { %2166 = vst.msk [vmem:[%s4162_s8 + $0x18] sm:$0xff] %vm1873_vm1, %v2118_v53  ;;  %2004 = vadd.xlane.f32.xlu1 %v2003_v32  ;;  %v1672_v32 = vmul.f32 %v3255_v63, %v1617_v41  ;;  %v1575_v54 = vmul.f32 %v3230_v31, %v3835_v29  ;;  %v2026_v18 = vmul.f32 0.25, %v1897_v13  ;;  %v1622_v45 = vsel %vm1525_vm4, %v3826_v16, %v1574_v59 }
 0x34f   :  { %v1891_v37 = vpop.xlane.xlu1 %1890  ;;  %v1800_v7 = vsel %vm1679_vm6, %v1671_v24, 0.0  ;;  %vm1526_vm5 = vcmp.ge.f32.partialorder %v3835_v29, 0.0  ;;  %v1572_v26 = vmul.f32 %v3230_v31, %v3844_v10  ;;  %vm1523_vm7 = vcmp.ge.f32.partialorder %v3844_v10, 0.0 }
 0x350   :  { %1995 = vadd.xlane.f32.xlu0 %v1994_v34  ;;  %v1573_v41 = vmul.f32 %v3230_v31, %v3855_v20  ;;  %v2006_v59 = vsel %vm1873_vm1, %v3844_v10, 0.0  ;;  %v1677_v31 = vmul.f32 %v3255_v63, %v1622_v45  ;;  %vm1524_vm8 = vcmp.ge.f32.partialorder %v3855_v20, 0.0 }
 0x351   :  { %v1700_v12 = vpop.xlane.xlu0 %1699 }
 0x352   :  { %v1831_v35 = vadd.f32 %v3752_v42, %v1700_v12  ;;  %1998 = vadd.xlane.f32.xlu1 %v1997_v0  ;;  %v2023_v12 = vmul.f32 0.25, %v1888_v5  ;;  %v2024_v5 = vmul.f32 0.25, %v1891_v37 }
 0x353   :  { %v1703_v46 = vpop.xlane.xlu1 %1702 }
 0x354   :  { %v2073_v62 = vadd.f32 %v1831_v35, %v3278_v28  ;;  %v1832_v53 = vadd.f32 %v3752_v42, %v1703_v46  ;;  %1807 = vadd.xlane.f32.xlu0 %v1806_v58  ;;  %v1803_v35 = vsel %vm1679_vm6, %v1672_v32, 0.0  ;;  %v1623_v58 = vsel %vm1526_vm5, %v3835_v29, %v1575_v54  ;;  %v2626_v54 = vld [vmem:[%s4159_s5] ss:$0 sm:$0xff] }
 0x355   :  { %v1694_v25 = vpop.xlane.xlu0 %1693  ;;  %v1818_v32 = vsel %vm1679_vm6, %v1677_v31, 0.0 }
 0x356   :  { %v2121_v2 = vsub.f32 %v2073_v62, %v2025_v11  ;;  %v2074_v28 = vadd.f32 %v1832_v53, %v3283_v47  ;;  %v1829_v34 = vadd.f32 %v3752_v42, %v1694_v25  ;;  %1810 = vadd.xlane.f32.xlu1 %v1809_v40  ;;  %v2009_v62 = vsel %vm1873_vm1, %v3855_v20, 0.0 }
 0x357   :  { %v1697_v61 = vpop.xlane.xlu1 %1696  ;;  %v1678_v53 = vmul.f32 %v3255_v63, %v1623_v58  ;;  %v1621_v25 = vsel %vm1524_vm8, %v3855_v20, %v1573_v41 }
 0x358   :  { %2169 = vst.msk [vmem:[%s4162_s8 + $0x30] sm:$0xff] %vm1873_vm1, %v2121_v2  ;;  %v2122_v47 = vsub.f32 %v2074_v28, %v2026_v18  ;;  %v2071_v13 = vadd.f32 %v1829_v34, %v3287_v56  ;;  %v1830_v0 = vadd.f32 %v3752_v42, %v1697_v61  ;;  %1801 = vadd.xlane.f32.xlu0 %v1800_v7 }
 0x359   :  { %v1906_v49 = vpop.xlane.xlu0 %1905  ;;  %v1821_v63 = vsel %vm1679_vm6, %v1678_v53, 0.0  ;;  %v1676_v28 = vmul.f32 %v2626_v54, %v1621_v25 }
 0x35a   :  { %2170 = vst.msk [vmem:[%s4162_s8 + $0x38] sm:$0xff] %vm1873_vm1, %v2122_v47  ;;  %v2119_v46 = vsub.f32 %v2071_v13, %v2023_v12  ;;  %v2072_v56 = vadd.f32 %v1830_v0, %v3294_v36  ;;  %1804 = vadd.xlane.f32.xlu1 %v1803_v35  ;;  %v1620_v36 = vsel %vm1523_vm7, %v3844_v10, %v1572_v26  ;;  %v2029_v45 = vmul.f32 0.25, %v1906_v49 }
 0x35b   :  { %v1909_v24 = vpop.xlane.xlu1 %1908  ;;  %v1675_v18 = vmul.f32 %v2626_v54, %v1620_v36  ;;  %v1815_v13 = vsel %vm1679_vm6, %v1676_v28, 0.0 }
 0x35c   :  { %2167 = vst.msk [vmem:[%s4162_s8 + $0x20] sm:$0xff] %vm1873_vm1, %v2119_v46  ;;  %v2120_v37 = vsub.f32 %v2072_v56, %v2024_v5  ;;  %2007 = vadd.xlane.f32.xlu0 %v2006_v59  ;;  %v2030_v0 = vmul.f32 0.25, %v1909_v24  ;;  %v2012_v56 = vsel %vm1873_vm1, %v3826_v16, 0.0  ;;  %v2015_v59 = vsel %vm1873_vm1, %v3835_v29, 0.0 }
 0x35d   :  { %v1900_v11 = vpop.xlane.xlu0 %1899  ;;  %v1812_v7 = vsel %vm1679_vm6, %v1675_v18, 0.0 }
 0x35e   :  { %2168 = vst.msk [vmem:[%s4162_s8 + $0x28] sm:$0xff] %vm1873_vm1, %v2120_v37  ;;  %2010 = vadd.xlane.f32.xlu1 %v2009_v62  ;;  %v2027_v49 = vmul.f32 0.25, %v1900_v11 }
 0x35f   :  { %v1903_v40 = vpop.xlane.xlu1 %1902 }
 0x360   :  { %1819 = vadd.xlane.f32.xlu0 %v1818_v32  ;;  %v2028_v31 = vmul.f32 0.25, %v1903_v40 }
 0x361   :  { %v1712_v2 = vpop.xlane.xlu0 %1711 }
 0x362   :  { %v1835_v34 = vadd.f32 %v3752_v42, %v1712_v2  ;;  %1822 = vadd.xlane.f32.xlu1 %v1821_v63 }
 0x363   :  { %v1715_v61 = vpop.xlane.xlu1 %1714 }
 0x364   :  { %v2077_v26 = vadd.f32 %v1835_v34, %v3322_v48  ;;  %v1836_v12 = vadd.f32 %v3752_v42, %v1715_v61  ;;  %1813 = vadd.xlane.f32.xlu0 %v1812_v7 }
 0x365   :  { %v1706_v47 = vpop.xlane.xlu0 %1705 }
 0x366   :  { %v2125_v35 = vsub.f32 %v2077_v26, %v2029_v45  ;;  %v2078_v41 = vadd.f32 %v1836_v12, %v3327_v51  ;;  %v1833_v5 = vadd.f32 %v3752_v42, %v1706_v47  ;;  %1816 = vadd.xlane.f32.xlu1 %v1815_v13 }
 0x367   :  { %v1709_v46 = vpop.xlane.xlu1 %1708 }
 0x368   :  { %2173 = vst.msk [vmem:[%s4162_s8 + $0x50] sm:$0xff] %vm1873_vm1, %v2125_v35  ;;  %v2126_v48 = vsub.f32 %v2078_v41, %v2030_v0  ;;  %v2075_v58 = vadd.f32 %v1833_v5, %v3331_v57  ;;  %v1834_v24 = vadd.f32 %v3752_v42, %v1709_v46  ;;  %2013 = vadd.xlane.f32.xlu0 %v2012_v56 }
 0x369   :  { %v1918_v51 = vpop.xlane.xlu0 %1917 }
 0x36a   :  { %2174 = vst.msk [vmem:[%s4162_s8 + $0x58] sm:$0xff] %vm1873_vm1, %v2126_v48  ;;  %v2123_v37 = vsub.f32 %v2075_v58, %v2027_v49  ;;  %v2076_v36 = vadd.f32 %v1834_v24, %v3342_v55  ;;  %2016 = vadd.xlane.f32.xlu1 %v2015_v59  ;;  %v2033_v55 = vmul.f32 0.25, %v1918_v51 }
 0x36b   :  { %v1921_v11 = vpop.xlane.xlu1 %1920 }
 0x36c   :  { %2171 = vst.msk [vmem:[%s4162_s8 + $0x40] sm:$0xff] %vm1873_vm1, %v2123_v37  ;;  %v2124_v57 = vsub.f32 %v2076_v36, %v2028_v31  ;;  %v2034_v63 = vmul.f32 0.25, %v1921_v11 }
 0x36d   :  { %v1912_v62 = vpop.xlane.xlu0 %1911 }
 0x36e   :  { %2172 = vst.msk [vmem:[%s4162_s8 + $0x48] sm:$0xff] %vm1873_vm1, %v2124_v57  ;;  %v2031_v45 = vmul.f32 0.25, %v1912_v62 }
 0x36f   :  { %v1915_v53 = vpop.xlane.xlu1 %1914 }
 0x370   :  { %v2032_v13 = vmul.f32 0.25, %v1915_v53 }
 0x371   :  { %v1724_v25 = vpop.xlane.xlu0 %1723 }
 0x372   :  { %v1839_v40 = vadd.f32 %v3752_v42, %v1724_v25 }
 0x373   :  { %v1727_v32 = vpop.xlane.xlu1 %1726 }
 0x374   :  { %v2081_v54 = vadd.f32 %v1839_v40, %v3382_v1  ;;  %v1840_v18 = vadd.f32 %v3752_v42, %v1727_v32 }
 0x375   :  { %v1718_v2 = vpop.xlane.xlu0 %1717 }
 0x376   :  { %v2129_v28 = vsub.f32 %v2081_v54, %v2033_v55  ;;  %v2082_v34 = vadd.f32 %v1840_v18, %v3387_v43  ;;  %v1837_v61 = vadd.f32 %v3752_v42, %v1718_v2 }
 0x377   :  { %v1721_v7 = vpop.xlane.xlu1 %1720 }
 0x378   :  { %2177 = vst.msk [vmem:[%s4162_s8 + $0x70] sm:$0xff] %vm1873_vm1, %v2129_v28  ;;  %v2130_v26 = vsub.f32 %v2082_v34, %v2034_v63  ;;  %v2079_v12 = vadd.f32 %v1837_v61, %v3391_v21  ;;  %v1838_v1 = vadd.f32 %v3752_v42, %v1721_v7 }
 0x379   :  { %v1930_v47 = vpop.xlane.xlu0 %1929 }
 0x37a   :  { %2178 = vst.msk [vmem:[%s4162_s8 + $0x78] sm:$0xff] %vm1873_vm1, %v2130_v26  ;;  %v2127_v43 = vsub.f32 %v2079_v12, %v2031_v45  ;;  %v2080_v0 = vadd.f32 %v1838_v1, %v3402_v9  ;;  %v2037_v48 = vmul.f32 0.25, %v1930_v47 }
 0x37b   :  { %v1933_v35 = vpop.xlane.xlu1 %1932 }
 0x37c   :  { %2175 = vst.msk [vmem:[%s4162_s8 + $0x60] sm:$0xff] %vm1873_vm1, %v2127_v43  ;;  %v2128_v41 = vsub.f32 %v2080_v0, %v2032_v13  ;;  %v2038_v51 = vmul.f32 0.25, %v1933_v35 }
 0x37d   :  { %v1924_v21 = vpop.xlane.xlu0 %1923 }
 0x37e   :  { %2176 = vst.msk [vmem:[%s4162_s8 + $0x68] sm:$0xff] %vm1873_vm1, %v2128_v41  ;;  %v2035_v11 = vmul.f32 0.25, %v1924_v21 }
 0x37f   :  { %v1927_v5 = vpop.xlane.xlu1 %1926 }
 0x380   :  { %v2036_v25 = vmul.f32 0.25, %v1927_v5 }
 0x381   :  { %v1736_v46 = vpop.xlane.xlu0 %1735 }
 0x382   :  { %v1843_v56 = vadd.f32 %v3752_v42, %v1736_v46 }
 0x383   :  { %v1739_v49 = vpop.xlane.xlu1 %1738 }
 0x384   :  { %v2085_v9 = vadd.f32 %v1843_v56, %v3443_v17  ;;  %v1844_v58 = vadd.f32 %v3752_v42, %v1739_v49 }
 0x385   :  { %v1730_v24 = vpop.xlane.xlu0 %1729 }
 0x386   :  { %v2133_v59 = vsub.f32 %v2085_v9, %v2037_v48  ;;  %v2086_v31 = vadd.f32 %v1844_v58, %v3449_v23  ;;  %v1841_v37 = vadd.f32 %v3752_v42, %v1730_v24 }
 0x387   :  { %v1733_v36 = vpop.xlane.xlu1 %1732 }
 0x388   :  { %2181 = vst.msk [vmem:[%s4162_s8 + $0x90] sm:$0xff] %vm1873_vm1, %v2133_v59  ;;  %v2134_v57 = vsub.f32 %v2086_v31, %v2038_v51  ;;  %v2083_v62 = vadd.f32 %v1841_v37, %v3454_v6  ;;  %v1842_v17 = vadd.f32 %v3752_v42, %v1733_v36 }
 0x389   :  { %v1942_v53 = vpop.xlane.xlu0 %1941 }
 0x38a   :  { %2182 = vst.msk [vmem:[%s4162_s8 + $0x98] sm:$0xff] %vm1873_vm1, %v2134_v57  ;;  %v2131_v23 = vsub.f32 %v2083_v62, %v2035_v11  ;;  %v2084_v40 = vadd.f32 %v1842_v17, %v3466_v3  ;;  %v2041_v28 = vmul.f32 0.25, %v1942_v53 }
 0x38b   :  { %v1945_v32 = vpop.xlane.xlu1 %1944 }
 0x38c   :  { %2179 = vst.msk [vmem:[%s4162_s8 + $0x80] sm:$0xff] %vm1873_vm1, %v2131_v23  ;;  %v2132_v55 = vsub.f32 %v2084_v40, %v2036_v25  ;;  %v2042_v7 = vmul.f32 0.25, %v1945_v32 }
 0x38d   :  { %v1936_v6 = vpop.xlane.xlu0 %1935 }
 0x38e   :  { %2180 = vst.msk [vmem:[%s4162_s8 + $0x88] sm:$0xff] %vm1873_vm1, %v2132_v55  ;;  %v2039_v47 = vmul.f32 0.25, %v1936_v6 }
 0x38f   :  { %v1939_v54 = vpop.xlane.xlu1 %1938 }
 0x390   :  { %v2040_v35 = vmul.f32 0.25, %v1939_v54 }
 0x391   :  { %v1748_v18 = vpop.xlane.xlu0 %1747 }
 0x392   :  { %v1847_v2 = vadd.f32 %v3752_v42, %v1748_v18 }
 0x393   :  { %v1751_v63 = vpop.xlane.xlu1 %1750 }
 0x394   :  { %v2089_v3 = vadd.f32 %v1847_v2, %v3507_v15  ;;  %v1848_v34 = vadd.f32 %v3752_v42, %v1751_v63 }
 0x395   :  { %v1742_v61 = vpop.xlane.xlu0 %1741 }
 0x396   :  { %v2137_v45 = vsub.f32 %v2089_v3, %v2041_v28  ;;  %v2090_v26 = vadd.f32 %v1848_v34, %v3513_v27  ;;  %v1845_v12 = vadd.f32 %v3752_v42, %v1742_v61 }
 0x397   :  { %v1745_v1 = vpop.xlane.xlu1 %1744 }
 0x398   :  { %2185 = vst.msk [vmem:[%s4162_s8 + $0xb0] sm:$0xff] %vm1873_vm1, %v2137_v45  ;;  %v2138_v13 = vsub.f32 %v2090_v26, %v2042_v7  ;;  %v2087_v43 = vadd.f32 %v1845_v12, %v3518_v14  ;;  %v1846_v15 = vadd.f32 %v3752_v42, %v1745_v1 }
 0x399   :  { %v1954_v0 = vpop.xlane.xlu0 %1953 }
 0x39a   :  { %2186 = vst.msk [vmem:[%s4162_s8 + $0xb8] sm:$0xff] %vm1873_vm1, %v2138_v13  ;;  %v2135_v27 = vsub.f32 %v2087_v43, %v2039_v47  ;;  %v2088_v41 = vadd.f32 %v1846_v15, %v3530_v60  ;;  %v2045_v9 = vmul.f32 0.25, %v1954_v0  ;;  %v4181_v13 = vld [vmem:[#allocation5_spill] sm:$0xff] }
 0x39b   :  { %v1957_v21 = vpop.xlane.xlu1 %1956 }
 0x39c   :  { %2183 = vst.msk [vmem:[%s4162_s8 + $0xa0] sm:$0xff] %vm1873_vm1, %v2135_v27  ;;  %v2136_v5 = vsub.f32 %v2088_v41, %v2040_v35  ;;  %v2046_v51 = vmul.f32 0.25, %v1957_v21 }
 0x39d   :  { %v1948_v14 = vpop.xlane.xlu0 %1947 }
 0x39e   :  { %2184 = vst.msk [vmem:[%s4162_s8 + $0xa8] sm:$0xff] %vm1873_vm1, %v2136_v5  ;;  %v2043_v11 = vmul.f32 0.25, %v1948_v14  ;;  %v4182_v14 = vld [vmem:[#allocation6_spill] sm:$0xff] }
 0x39f   :  { %v1951_v46 = vpop.xlane.xlu1 %1950 }
 0x3a0   :  { %v2044_v53 = vmul.f32 0.25, %v1951_v46 }
 0x3a1   :  { %v1760_v56 = vpop.xlane.xlu0 %1759 }
 0x3a2   :  { %v1851_v49 = vadd.f32 %v3752_v42, %v1760_v56 }
 0x3a3   :  { %v1763_v48 = vpop.xlane.xlu1 %1762 }
 0x3a4   :  { %v2093_v60 = vadd.f32 %v1851_v49, %v3571_v33  ;;  %v1852_v58 = vadd.f32 %v3752_v42, %v1763_v48 }
 0x3a5   :  { %v1754_v24 = vpop.xlane.xlu0 %1753 }
 0x3a6   :  { %v2141_v59 = vsub.f32 %v2093_v60, %v2045_v9  ;;  %v2094_v31 = vadd.f32 %v1852_v58, %v3577_v39  ;;  %v1849_v37 = vadd.f32 %v3752_v42, %v1754_v24  ;;  %v4183_v60 = vld [vmem:[#allocation7_spill] sm:$0xff] }
 0x3a7   :  { %v1757_v36 = vpop.xlane.xlu1 %1756 }
 0x3a8   :  { %2189 = vst.msk [vmem:[%s4162_s8 + $0xd0] sm:$0xff] %vm1873_vm1, %v2141_v59  ;;  %v2142_v57 = vsub.f32 %v2094_v31, %v2046_v51  ;;  %v2091_v62 = vadd.f32 %v1849_v37, %v3582_v44  ;;  %v1850_v33 = vadd.f32 %v3752_v42, %v1757_v36  ;;  %v4184_v37 = vld [vmem:[#allocation8_spill] sm:$0xff] }
 0x3a9   :  { %v1966_v17 = vpop.xlane.xlu0 %1965 }
 0x3aa   :  { %2190 = vst.msk [vmem:[%s4162_s8 + $0xd8] sm:$0xff] %vm1873_vm1, %v2142_v57  ;;  %v2139_v39 = vsub.f32 %v2091_v62, %v2043_v11  ;;  %v2092_v25 = vadd.f32 %v1850_v33, %v3590_v52  ;;  %v2049_v18 = vmul.f32 0.25, %v1966_v17  ;;  %v4185_v17 = vld [vmem:[#allocation9_spill] sm:$0xff] }
 0x3ab   :  { %v1969_v23 = vpop.xlane.xlu1 %1968 }
 0x3ac   :  { %2187 = vst.msk [vmem:[%s4162_s8 + $0xc0] sm:$0xff] %vm1873_vm1, %v2139_v39  ;;  %v2140_v40 = vsub.f32 %v2092_v25, %v2044_v53  ;;  %v2050_v28 = vmul.f32 0.25, %v1969_v23 }
 0x3ad   :  { %v1960_v44 = vpop.xlane.xlu0 %1959 }
 0x3ae   :  { %2188 = vst.msk [vmem:[%s4162_s8 + $0xc8] sm:$0xff] %vm1873_vm1, %v2140_v40  ;;  %v2047_v45 = vmul.f32 0.25, %v1960_v44 }
 0x3af   :  { %v1963_v32 = vpop.xlane.xlu1 %1962 }
 0x3b0   :  { %v2048_v47 = vmul.f32 0.25, %v1963_v32 }
 0x3b1   :  { %v1772_v55 = vpop.xlane.xlu0 %1771 }
 0x3b2   :  { %v1855_v6 = vadd.f32 %v3752_v42, %v1772_v55 }
 0x3b3   :  { %v1775_v54 = vpop.xlane.xlu1 %1774 }
 0x3b4   :  { %v2097_v52 = vadd.f32 %v1855_v6, %v3619_v4  ;;  %v1856_v2 = vadd.f32 %v3752_v42, %v1775_v54  ;;  %v4186_v54 = vld [vmem:[#allocation10_spill] sm:$0xff] }
 0x3b5   :  { %v1766_v63 = vpop.xlane.xlu0 %1765 }
 0x3b6   :  { %v2145_v3 = vsub.f32 %v2097_v52, %v2049_v18  ;;  %v2098_v34 = vadd.f32 %v1856_v2, %v3625_v8  ;;  %v1853_v61 = vadd.f32 %v3752_v42, %v1766_v63 }
 0x3b7   :  { %v1769_v7 = vpop.xlane.xlu1 %1768 }
 0x3b8   :  { %2193 = vst.msk [vmem:[%s4162_s8 + $0xf0] sm:$0xff] %vm1873_vm1, %v2145_v3  ;;  %v2146_v26 = vsub.f32 %v2098_v34, %v2050_v28  ;;  %v2095_v12 = vadd.f32 %v1853_v61, %v3630_v38  ;;  %v1854_v4 = vadd.f32 %v3752_v42, %v1769_v7  ;;  %v4187_v3 = vld [vmem:[#allocation11_spill] sm:$0xff] }
 0x3b9   :  { %v1978_v1 = vpop.xlane.xlu0 %1977 }
 0x3ba   :  { %2194 = vst.msk [vmem:[%s4162_s8 + $0xf8] sm:$0xff] %vm1873_vm1, %v2146_v26  ;;  %v2143_v8 = vsub.f32 %v2095_v12, %v2047_v45  ;;  %v2096_v43 = vadd.f32 %v1854_v4, %v4181_v13  ;;  %v2053_v5 = vmul.f32 0.25, %v1978_v1  ;;  %v4188_v12 = vld [vmem:[#allocation12_spill] sm:$0xff] }
 0x3bb   :  { %v1981_v15 = vpop.xlane.xlu1 %1980 }
 0x3bc   :  { %2191 = vst.msk [vmem:[%s4162_s8 + $0xe0] sm:$0xff] %vm1873_vm1, %v2143_v8  ;;  %v2144_v0 = vsub.f32 %v2096_v43, %v2048_v47  ;;  %v2054_v48 = vmul.f32 0.25, %v1981_v15  ;;  %v4189_v43 = vld [vmem:[#allocation13_spill] sm:$0xff] }
 0x3bd   :  { %v1972_v38 = vpop.xlane.xlu0 %1971 }
 0x3be   :  { %2192 = vst.msk [vmem:[%s4162_s8 + $0xe8] sm:$0xff] %vm1873_vm1, %v2144_v0  ;;  %v2051_v59 = vmul.f32 0.25, %v1972_v38 }
 0x3bf   :  { %v1975_v35 = vpop.xlane.xlu1 %1974 }
 0x3c0   :  { %v2052_v62 = vmul.f32 0.25, %v1975_v35 }
 0x3c1   :  { %v1784_v27 = vpop.xlane.xlu0 %1783 }
 0x3c2   :  { %v1859_v41 = vadd.f32 %v3752_v42, %v1784_v27 }
 0x3c3   :  { %v1787_v21 = vpop.xlane.xlu1 %1786 }
 0x3c4   :  { %v2101_v46 = vadd.f32 %v1859_v41, %v4182_v14  ;;  %v1860_v56 = vadd.f32 %v3752_v42, %v1787_v21 }
 0x3c5   :  { %v1778_v49 = vpop.xlane.xlu0 %1777 }
 0x3c6   :  { %v2149_v9 = vsub.f32 %v2101_v46, %v2053_v5  ;;  %v2102_v58 = vadd.f32 %v1860_v56, %v4183_v60  ;;  %v1857_v24 = vadd.f32 %v3752_v42, %v1778_v49 }
 0x3c7   :  { %v1781_v51 = vpop.xlane.xlu1 %1780 }
 0x3c8   :  { %2197 = vst.msk [vmem:[%s4162_s8 + $0x110] sm:$0xff] %vm1873_vm1, %v2149_v9  ;;  %v2150_v31 = vsub.f32 %v2102_v58, %v2054_v48  ;;  %v2099_v36 = vadd.f32 %v1857_v24, %v4184_v37  ;;  %v1858_v11 = vadd.f32 %v3752_v42, %v1781_v51 }
 0x3c9   :  { %v1990_v57 = vpop.xlane.xlu0 %1989 }
 0x3ca   :  { %2198 = vst.msk [vmem:[%s4162_s8 + $0x118] sm:$0xff] %vm1873_vm1, %v2150_v31  ;;  %v2147_v33 = vsub.f32 %v2099_v36, %v2051_v59  ;;  %v2100_v53 = vadd.f32 %v1858_v11, %v4185_v17  ;;  %v2057_v6 = vmul.f32 0.25, %v1990_v57 }
 0x3cb   :  { %v1993_v39 = vpop.xlane.xlu1 %1992 }
 0x3cc   :  { %2195 = vst.msk [vmem:[%s4162_s8 + $0x100] sm:$0xff] %vm1873_vm1, %v2147_v33  ;;  %v2148_v25 = vsub.f32 %v2100_v53, %v2052_v62  ;;  %v2058_v63 = vmul.f32 0.25, %v1993_v39 }
 0x3cd   :  { %v1984_v23 = vpop.xlane.xlu0 %1983 }
 0x3ce   :  { %2196 = vst.msk [vmem:[%s4162_s8 + $0x108] sm:$0xff] %vm1873_vm1, %v2148_v25  ;;  %v2055_v45 = vmul.f32 0.25, %v1984_v23 }
 0x3cf   :  { %v1987_v40 = vpop.xlane.xlu1 %1986 }
 0x3d0   :  { %v2056_v8 = vmul.f32 0.25, %v1987_v40 }
 0x3d1   :  { %v1796_v44 = vpop.xlane.xlu0 %1795 }
 0x3d2   :  { %v1863_v32 = vadd.f32 %v3752_v42, %v1796_v44 }
 0x3d3   :  { %v1799_v55 = vpop.xlane.xlu1 %1798 }
 0x3d4   :  { %v2105_v18 = vadd.f32 %v1863_v32, %v4186_v54  ;;  %v1864_v52 = vadd.f32 %v3752_v42, %v1799_v55 }
 0x3d5   :  { %v1790_v2 = vpop.xlane.xlu0 %1789 }
 0x3d6   :  { %v2153_v28 = vsub.f32 %v2105_v18, %v2057_v6  ;;  %v2106_v34 = vadd.f32 %v1864_v52, %v4187_v3  ;;  %v1861_v61 = vadd.f32 %v3752_v42, %v1790_v2 }
 0x3d7   :  { %v1793_v7 = vpop.xlane.xlu1 %1792 }
 0x3d8   :  { %2201 = vst.msk [vmem:[%s4162_s8 + $0x130] sm:$0xff] %vm1873_vm1, %v2153_v28  ;;  %v2154_v26 = vsub.f32 %v2106_v34, %v2058_v63  ;;  %v2103_v4 = vadd.f32 %v1861_v61, %v4188_v12  ;;  %v1862_v1 = vadd.f32 %v3752_v42, %v1793_v7 }
 0x3d9   :  { %v2002_v47 = vpop.xlane.xlu0 %2001 }
 0x3da   :  { %2202 = vst.msk [vmem:[%s4162_s8 + $0x138] sm:$0xff] %vm1873_vm1, %v2154_v26  ;;  %v2151_v13 = vsub.f32 %v2103_v4, %v2055_v45  ;;  %v2104_v15 = vadd.f32 %v1862_v1, %v4189_v43  ;;  %v2061_v14 = vmul.f32 0.25, %v2002_v47 }
 0x3db   :  { %v2005_v0 = vpop.xlane.xlu1 %2004 }
 0x3dc   :  { %2199 = vst.msk [vmem:[%s4162_s8 + $0x120] sm:$0xff] %vm1873_vm1, %v2151_v13  ;;  %v2152_v38 = vsub.f32 %v2104_v15, %v2056_v8  ;;  %v2062_v48 = vmul.f32 0.25, %v2005_v0 }
 0x3dd   :  { %v1996_v35 = vpop.xlane.xlu0 %1995 }
 0x3de   :  { %2200 = vst.msk [vmem:[%s4162_s8 + $0x128] sm:$0xff] %vm1873_vm1, %v2152_v38  ;;  %v2059_v51 = vmul.f32 0.25, %v1996_v35 }
 0x3df   :  { %v1999_v27 = vpop.xlane.xlu1 %1998 }
 0x3e0   :  { %v2060_v36 = vmul.f32 0.25, %v1999_v27 }
 0x3e1   :  { %v1808_v41 = vpop.xlane.xlu0 %1807 }
 0x3e2   :  { %v1867_v21 = vadd.f32 %v3752_v42, %v1808_v41 }
 0x3e3   :  { %v1811_v5 = vpop.xlane.xlu1 %1810 }
 0x3e4   :  { %v2109_v46 = vadd.f32 %v1867_v21, %v3764_v30  ;;  %v1868_v56 = vadd.f32 %v3752_v42, %v1811_v5 }
 0x3e5   :  { %v1802_v49 = vpop.xlane.xlu0 %1801 }
 0x3e6   :  { %v2157_v9 = vsub.f32 %v2109_v46, %v2061_v14  ;;  %v2110_v60 = vadd.f32 %v1868_v56, %v3772_v19  ;;  %v1865_v58 = vadd.f32 %v3752_v42, %v1802_v49 }
 0x3e7   :  { %v1805_v24 = vpop.xlane.xlu1 %1804 }
 0x3e8   :  { %2205 = vst.msk [vmem:[%s4162_s8 + $0x150] sm:$0xff] %vm1873_vm1, %v2157_v9  ;;  %v2158_v59 = vsub.f32 %v2110_v60, %v2062_v48  ;;  %v2107_v31 = vadd.f32 %v1865_v58, %v3780_v50  ;;  %v1866_v30 = vadd.f32 %v3752_v42, %v1805_v24 }
 0x3e9   :  { %v2008_v37 = vpop.xlane.xlu0 %2007 }
 0x3ea   :  { %2206 = vst.msk [vmem:[%s4162_s8 + $0x158] sm:$0xff] %vm1873_vm1, %v2158_v59  ;;  %v2155_v19 = vsub.f32 %v2107_v31, %v2059_v51  ;;  %v2108_v11 = vadd.f32 %v1866_v30, %v3793_v22  ;;  %v2063_v25 = vmul.f32 0.25, %v2008_v37 }
 0x3eb   :  { %v2011_v57 = vpop.xlane.xlu1 %2010 }
 0x3ec   :  { %2203 = vst.msk [vmem:[%s4162_s8 + $0x140] sm:$0xff] %vm1873_vm1, %v2155_v19  ;;  %v2156_v62 = vsub.f32 %v2108_v11, %v2060_v36  ;;  %v2064_v32 = vmul.f32 0.25, %v2011_v57 }
 0x3ed   :  { %v1820_v50 = vpop.xlane.xlu0 %1819 }
 0x3ee   :  { %2204 = vst.msk [vmem:[%s4162_s8 + $0x148] sm:$0xff] %vm1873_vm1, %v2156_v62  ;;  %v1871_v53 = vadd.f32 %v3752_v42, %v1820_v50 }
 0x3ef   :  { %v1823_v33 = vpop.xlane.xlu1 %1822 }
 0x3f0   :  { %v1872_v23 = vadd.f32 %v3752_v42, %v1823_v33  ;;  %v2113_v6 = vadd.f32 %v1871_v53, %v3826_v16 }
 0x3f1   :  { %v1814_v17 = vpop.xlane.xlu0 %1813 }
 0x3f2   :  { %v1869_v39 = vadd.f32 %v3752_v42, %v1814_v17  ;;  %v2114_v63 = vadd.f32 %v1872_v23, %v3835_v29 }
 0x3f3   :  { %v1817_v22 = vpop.xlane.xlu1 %1816 }
 0x3f4   :  { %v2111_v40 = vadd.f32 %v1869_v39, %v3844_v10  ;;  %v1870_v44 = vadd.f32 %v3752_v42, %v1817_v22 }
 0x3f5   :  { %v2014_v55 = vpop.xlane.xlu0 %2013 }
 0x3f6   :  { %v2159_v54 = vsub.f32 %v2111_v40, %v2063_v25  ;;  %v2112_v18 = vadd.f32 %v1870_v44, %v3855_v20  ;;  %v2065_v52 = vmul.f32 0.25, %v2014_v55 }
 0x3f7   :  { %v2017_v2 = vpop.xlane.xlu1 %2016 }
 0x3f8   :  { %2207 = vst.msk [vmem:[%s4162_s8 + $0x160] sm:$0xff] %vm1873_vm1, %v2159_v54  ;;  %v2160_v28 = vsub.f32 %v2112_v18, %v2064_v32  ;;  %v2161_v10 = vsub.f32 %v2113_v6, %v2065_v52  ;;  %v2066_v3 = vmul.f32 0.25, %v2017_v2 }
 0x3fa   :  { %2208 = vst.msk [vmem:[%s4162_s8 + $0x168] sm:$0xff] %vm1873_vm1, %v2160_v28  ;;  %2209 = vst.msk [vmem:[%s4162_s8 + $0x170] sm:$0xff] %vm1873_vm1, %v2161_v10  ;;  %v2162_v42 = vsub.f32 %v2114_v63, %v2066_v3 }
 0x3fc   :  { %2210 = vst.msk [vmem:[%s4162_s8 + $0x178] sm:$0xff] %vm1873_vm1, %v2162_v42 }
 0x3fd   :  { %2215 = vsyncpa [#allocation3], 1 }

</bundles_post_ra>
